<compile_context>
chip_gen: v7x
topology: tpu7x:2x2x1
jax: 0.10.0
libtpu: 0.0.40
codegen_flags: <defaults>
</compile_context>

<pallas_src>
import jax
import jax.numpy as jnp
from jax import lax
from jax.experimental import pallas as pl
from jax.experimental.pallas import tpu as pltpu


def _cand_repr_kernel(tile_batch_ref, tile_active_ref, bounds_ref, wr_ref, out_ref):
    """One grid step = one tile of TN candidates, all from the same batch row.

    tile_batch_ref : SMEM (num_tiles,) int32 scalar prefetch (index_map only)
    tile_active_ref: SMEM (num_tiles,) int32 #real candidates in this tile
    bounds_ref     : VMEM (TN, 2) int32 (sid, eid) span bounds for this tile
    wr_ref         : VMEM (1, S, D)  word_repr[b] for this tile's batch element
    out_ref        : VMEM (TN, D)    span-mean candidate representations
    """
    del tile_batch_ref  # consumed only by the BlockSpec index_maps

    t = pl.program_id(0)
    active = tile_active_ref[t]

    @pl.when(active != 0)
    def _compute():
        bounds = bounds_ref[...]                        # (TN, 2) int32
        sid = bounds[:, 0:1]                            # (TN, 1)
        eid = bounds[:, 1:2]                            # (TN, 1)
        wr = wr_ref[0]                                  # (S, D)

        tn = out_ref.shape[0]
        s = wr.shape[0]

        # (TN, S) 0/1 span mask; the per-candidate span sum becomes MXU matmuls.
        pos = lax.broadcasted_iota(jnp.int32, (tn, s), 1)
        in_span = (pos >= sid) & (pos < eid)

        if wr.dtype == jnp.float32:
            # hi/lo bf16 split: the 0/1 mask is exact in bf16, so two default-
            # precision bf16 MXU passes accumulated in f32 recover ~f32 accuracy
            # (instead of HIGHEST's 3-6 passes).
            mask = in_span.astype(jnp.bfloat16)
            hi = wr.astype(jnp.bfloat16)
            lo = (wr - hi.astype(jnp.float32)).astype(jnp.bfloat16)
            summed = (jnp.dot(mask, hi, preferred_element_type=jnp.float32)
                      + jnp.dot(mask, lo, preferred_element_type=jnp.float32))
        else:
            mask = in_span.astype(wr.dtype)
            summed = jnp.dot(mask, wr, preferred_element_type=jnp.float32)

        # 1/len scale: EUP approx reciprocal + one Newton step (off the VALU,
        # ~f32 exact).  Zero for empty / padding / malformed (eid <= sid) slots,
        # matching the PyTorch `if sid == eid: continue`.
        length = (eid - sid).astype(jnp.float32)        # (TN, 1)
        denom = jnp.maximum(length, 1.0)
        inv = pl.reciprocal(denom, approx=True)
        inv = inv * (2.0 - denom * inv)
        scale = jnp.where(length > 0.0, inv, 0.0)

        out_ref[...] = (summed * scale).astype(out_ref.dtype)

    @pl.when(active == 0)
    def _skip():
        # Fully-padded tile: no mask build / matmul, just keep output defined.
        out_ref[...] = jnp.zeros_like(out_ref)


def candidate_representation_layer(word_repr, candidates_idx, anchor_loc,
                                   anchor_cls, strategy="mean", cand_tile=256,
                                   return_packed=False):
    """Dense equivalent of CandidateRepresentationLayer.get_candidates_repr."""
    assert strategy in ("mean", "first")
    B, S, D = word_repr.shape
    N = candidates_idx.shape[0]
    TN = cand_tile

    b_idx = candidates_idx[:, 0].astype(jnp.int32)
    wid = candidates_idx[:, 1].astype(jnp.int32)
    aid = candidates_idx[:, 2].astype(jnp.int32)

    # Glue (plain JAX gathers): per-candidate loc / label / span bounds.
    locs = anchor_loc[b_idx, wid, aid].astype(jnp.int32)    # (N, 2)
    labels = anchor_cls[b_idx, wid, aid]                    # (N,)
    sids = locs[:, 0]
    eids = locs[:, 1]
    # PyTorch skips sid == eid; a malformed eid < sid would slice an empty span
    # there too, so only eid > sid counts as valid (zero repr otherwise).
    valid = eids > sids
    cand_len = jnp.zeros((B,), jnp.int32).at[b_idx].add(valid.astype(jnp.int32))

    # 'first' strategy == mean over the 1-element span [sid, sid+1).
    eids_k = jnp.where(valid, sids + 1, sids) if strategy == "first" else eids

    # ---- Group candidates by batch into TN-aligned, per-batch-padded slots ---
    counts = jnp.zeros((B,), jnp.int32).at[b_idx].add(1)          # per-batch #cands
    padded_counts = ((counts + TN - 1) // TN) * TN                # TN-aligned
    padded_start = jnp.concatenate(
        [jnp.zeros((1,), jnp.int32), jnp.cumsum(padded_counts)[:-1]]).astype(jnp.int32)
    start = jnp.concatenate(
        [jnp.zeros((1,), jnp.int32), jnp.cumsum(counts)[:-1]]).astype(jnp.int32)

    order = jnp.argsort(b_idx, stable=True)                       # sort cands by batch
    sorted_b = b_idx[order]
    rank = jnp.arange(N, dtype=jnp.int32) - start[sorted_b]       # rank within batch
    slot = padded_start[sorted_b] + rank                          # packed slot id

    # Static upper bound on sum_b padded_counts[b]; multiple of TN.
    P = pl.cdiv(N, TN) * TN + B * TN
    num_tiles = P // TN

    # Per-slot (sid, eid); padding slots keep sid = eid = 0 -> zero output.
    bounds_sorted = jnp.stack([sids[order], eids_k[order]], axis=-1)   # (N, 2)
    slot_bounds = jnp.zeros((P, 2), jnp.int32).at[slot].set(bounds_sorted)

    # Per-tile number of real (non-padding) candidates -> lets the kernel skip
    # fully-padded tiles entirely.
    occupied = jnp.zeros((P,), jnp.int32).at[slot].set(1)
    tile_active = occupied.reshape(num_tiles, TN).sum(axis=1).astype(jnp.int32)

    # Batch element owning each tile; trailing empty tiles clamp to the last
    # batch that actually has candidates so the word_repr block index stays
    # constant at the tail (no spurious DMA).
    padded_end = jnp.cumsum(padded_counts).astype(jnp.int32)      # (B,)
    tile_start = jnp.arange(num_tiles, dtype=jnp.int32) * TN
    tile_batch = jnp.sum((tile_start[:, None] >= padded_end[None, :]).astype(jnp.int32),
                         axis=1)
    has_cand = counts > 0
    last_nonempty = jnp.max(jnp.where(has_cand, jnp.arange(B, dtype=jnp.int32), 0))
    tile_batch = jnp.minimum(tile_batch, last_nonempty).astype(jnp.int32)

    # ---- Pallas kernel: per-tile masked span mean on the MXU ----------------
    grid_spec = pltpu.PrefetchScalarGridSpec(
        num_scalar_prefetch=2,
        grid=(num_tiles,),
        in_specs=[
            pl.BlockSpec((TN, 2), lambda t, tb, ta: (t, 0)),           # (sid,eid)
            pl.BlockSpec((1, S, D), lambda t, tb, ta: (tb[t], 0, 0)),  # word_repr[b]
        ],
        out_specs=pl.BlockSpec((TN, D), lambda t, tb, ta: (t, 0)),
    )
    padded_repr = pl.pallas_call(
        _cand_repr_kernel,
        out_shape=jax.ShapeDtypeStruct((P, D), word_repr.dtype),
        grid_spec=grid_spec,
        compiler_params=pltpu.CompilerParams(
            dimension_semantics=("parallel",),
            vmem_limit_bytes=48 * 1024 * 1024),
    )(tile_batch, tile_active, slot_bounds, word_repr)

    cand_slot = jnp.zeros((N,), jnp.int32).at[order].set(slot)

    if return_packed:
        # Downstream can consume the packed (P, D) layout + slot map directly,
        # avoiding the extra HBM round-trip of the unpermute gather.
        return padded_repr, cand_slot, labels, cand_len, locs, valid

    reprs = padded_repr[cand_slot]                                 # (N, D)

    # Note: nn.Dropout is constructed in the PyTorch module but never applied
    # in forward(), so there is nothing to translate for it.
    return reprs, labels, cand_len, locs, valid


def _reference(word_repr, candidates_idx, anchor_loc, anchor_cls):
    """Pure-JAX reference for the dense outputs (strategy='mean')."""
    b_idx = candidates_idx[:, 0]
    wid = candidates_idx[:, 1]
    aid = candidates_idx[:, 2]
    locs = anchor_loc[b_idx, wid, aid]
    sids, eids = locs[:, 0], locs[:, 1]
    S = word_repr.shape[1]
    pos = jnp.arange(S)[None, :]
    mask = (pos >= sids[:, None]) & (pos < eids[:, None])          # (N, S)
    wr_per_cand = word_repr[b_idx]                                 # (N, S, D)
    summed = jnp.sum(mask[:, :, None] * wr_per_cand, axis=1)
    length = eids - sids
    denom = jnp.maximum(length, 1).astype(word_repr.dtype)[:, None]
    valid = length > 0
    reprs = jnp.where(valid[:, None], summed / denom, 0.0)
    B = word_repr.shape[0]
    lens = jnp.zeros((B,), jnp.int32).at[b_idx].add(valid.astype(jnp.int32))
    return reprs, lens


if __name__ == "__main__":
    key = jax.random.PRNGKey(0)
    # batch, seq, hidden, anchor_num, #candidate rows
    B, S, D, A, N = 2, 32, 128, 3, 64

    k1, k2, k3, k4, k5, k6, k7 = jax.random.split(key, 7)
    word_repr = jax.random.normal(k1, (B, S, D), dtype=jnp.float32)

    # anchor_loc: (B, S, A, 2) with sid in [0, S), eid = sid + len, len in [0, 3]
    sid = jax.random.randint(k2, (B, S, A), 0, S)
    span = jax.random.randint(k3, (B, S, A), 0, 4)    # some spans have len 0 (skipped)
    eid = jnp.minimum(sid + span, S)
    anchor_loc = jnp.stack([sid, eid], axis=-1).astype(jnp.int32)

    # anchor_cls: (B, S, A) integer labels
    anchor_cls = jax.random.randint(k4, (B, S, A), 0, 10, dtype=jnp.int32)

    # candidates_idx: (N, 3) rows of (batch_idx, word_idx, anchor_idx)
    cb = jax.random.randint(k5, (N,), 0, B)
    cw = jax.random.randint(k6, (N,), 0, S)
    ca = jax.random.randint(k7, (N,), 0, A)
    candidates_idx = jnp.stack([cb, cw, ca], axis=-1).astype(jnp.int32)

    reprs, labels, lens, locs, valid = candidate_representation_layer(
        word_repr, candidates_idx, anchor_loc, anchor_cls,
        strategy="mean", cand_tile=256)
    jax.block_until_ready(reprs)

    ref_reprs, ref_lens = _reference(word_repr, candidates_idx, anchor_loc, anchor_cls)
    assert jnp.allclose(reprs, ref_reprs, atol=1e-3, rtol=1e-3), "repr mismatch"
    assert jnp.array_equal(lens, ref_lens), "candidate-count mismatch"

    print("KERNEL_OK")
</pallas_src>

<mosaic_0001>
module attributes {stable_mosaic.version = 11 : i64} {
  func.func @_cand_repr_kernel(%arg0: i32, %arg1: memref<3xi32, #tpu.memory_space<smem>>, %arg2: memref<3xi32, #tpu.memory_space<smem>>, %arg3: memref<256x2xi32, #tpu.memory_space<vmem>>, %arg4: memref<1x32x128xf32, #tpu.memory_space<vmem>>, %arg5: memref<256x128xf32, #tpu.memory_space<vmem>>) attributes {dimension_semantics = [#tpu.dimension_semantics<parallel>], iteration_bounds = array<i64: 3>, scalar_prefetch = 2 : i64, scratch_operands = 0 : i64, tpu.core_type = #tpu.core_type<tc>, window_params = [{transform_indices = @transform_0, window_bounds = array<i64: 256, 2>}, {transform_indices = @transform_1, window_bounds = array<i64: 1, 32, 128>}, {transform_indices = @transform_2, window_bounds = array<i64: 256, 128>}]} {
    %0 = arith.index_cast %arg0 : i32 to index
    %1 = memref.load %arg2[%0] : memref<3xi32, #tpu.memory_space<smem>>
    %c0_i32 = arith.constant 0 : i32
    %2 = arith.cmpi ne, %1, %c0_i32 : i32
    %3 = arith.extui %2 : i1 to i32
    %c0_i32_0 = arith.constant 0 : i32
    %4 = arith.cmpi ne, %3, %c0_i32_0 : i32
    scf.if %4 {
      %c0 = arith.constant 0 : index
      %c0_3 = arith.constant 0 : index
      %8 = vector.load %arg3[%c0, %c0_3] : memref<256x2xi32, #tpu.memory_space<vmem>>, vector<256x2xi32>
      %9 = vector.extract_strided_slice %8 {offsets = [0, 0], sizes = [256, 1], strides = [1, 1]} : vector<256x2xi32> to vector<256x1xi32>
      %10 = vector.extract_strided_slice %8 {offsets = [0, 1], sizes = [256, 1], strides = [1, 1]} : vector<256x2xi32> to vector<256x1xi32>
      %c0_4 = arith.constant 0 : index
      %c0_5 = arith.constant 0 : index
      %c0_6 = arith.constant 0 : index
      %11 = vector.load %arg4[%c0_4, %c0_5, %c0_6] : memref<1x32x128xf32, #tpu.memory_space<vmem>>, vector<1x32x128xf32>
      %12 = vector.shape_cast %11 : vector<1x32x128xf32> to vector<32x128xf32>
      %13 = tpu.iota {dimensions = array<i32: 1>} : vector<256x32xi32>
      %14 = vector.broadcast %9 : vector<256x1xi32> to vector<256x32xi32>
      %15 = arith.cmpi sge, %13, %14 : vector<256x32xi32>
      %16 = vector.broadcast %10 : vector<256x1xi32> to vector<256x32xi32>
      %17 = arith.cmpi slt, %13, %16 : vector<256x32xi32>
      %18 = arith.andi %15, %17 : vector<256x32xi1>
      %19 = arith.extui %18 : vector<256x32xi1> to vector<256x32xi32>
      %20 = arith.sitofp %19 : vector<256x32xi32> to vector<256x32xf32>
      %21 = arith.truncf %20 : vector<256x32xf32> to vector<256x32xbf16>
      %22 = arith.truncf %12 : vector<32x128xf32> to vector<32x128xbf16>
      %23 = arith.extf %22 : vector<32x128xbf16> to vector<32x128xf32>
      %24 = arith.subf %12, %23 : vector<32x128xf32>
      %25 = arith.truncf %24 : vector<32x128xf32> to vector<32x128xbf16>
      %cst = arith.constant dense<0.000000e+00> : vector<256x128xf32>
      %26 = tpu.matmul %21, %22, %cst {dimension_numbers = #tpu.dot_dimension_numbers<[1], [0], [0], [1], [0, 0, 1, 1], [], []>} : vector<256x32xbf16>, vector<32x128xbf16>, vector<256x128xf32> -> vector<256x128xf32>
      %cst_7 = arith.constant dense<0.000000e+00> : vector<256x128xf32>
      %27 = tpu.matmul %21, %25, %cst_7 {dimension_numbers = #tpu.dot_dimension_numbers<[1], [0], [0], [1], [0, 0, 1, 1], [], []>} : vector<256x32xbf16>, vector<32x128xbf16>, vector<256x128xf32> -> vector<256x128xf32>
      %28 = arith.addf %26, %27 : vector<256x128xf32>
      %29 = arith.subi %10, %9 : vector<256x1xi32>
      %30 = arith.sitofp %29 : vector<256x1xi32> to vector<256x1xf32>
      %cst_8 = arith.constant 1.000000e+00 : f32
      %31 = vector.broadcast %cst_8 : f32 to vector<256x1xf32>
      %32 = arith.maximumf %30, %31 : vector<256x1xf32>
      %33 = tpu.reciprocal %32 {approx = true} : vector<256x1xf32> -> vector<256x1xf32>
      %34 = arith.mulf %32, %33 : vector<256x1xf32>
      %cst_9 = arith.constant 2.000000e+00 : f32
      %35 = vector.broadcast %cst_9 : f32 to vector<256x1xf32>
      %36 = arith.subf %35, %34 : vector<256x1xf32>
      %37 = arith.mulf %33, %36 : vector<256x1xf32>
      %cst_10 = arith.constant 0.000000e+00 : f32
      %38 = vector.broadcast %cst_10 : f32 to vector<256x1xf32>
      %39 = arith.cmpf ogt, %30, %38 : vector<256x1xf32>
      %cst_11 = arith.constant 0.000000e+00 : f32
      %40 = vector.broadcast %cst_11 : f32 to vector<256x1xf32>
      %41 = arith.select %39, %37, %40 : vector<256x1xi1>, vector<256x1xf32>
      %42 = vector.broadcast %41 : vector<256x1xf32> to vector<256x128xf32>
      %43 = arith.mulf %28, %42 : vector<256x128xf32>
      %c0_12 = arith.constant 0 : index
      %c0_13 = arith.constant 0 : index
      %44 = vector.load %arg5[%c0_12, %c0_13] : memref<256x128xf32, #tpu.memory_space<vmem>>, vector<256x128xf32>
      tpu.vector_store %arg5[%c0_12, %c0_13], %43 {strides = array<i32>} : memref<256x128xf32, #tpu.memory_space<vmem>>, vector<256x128xf32>,
    } else {
    }
    %c0_i32_1 = arith.constant 0 : i32
    %5 = arith.cmpi eq, %1, %c0_i32_1 : i32
    %6 = arith.extui %5 : i1 to i32
    %c0_i32_2 = arith.constant 0 : i32
    %7 = arith.cmpi ne, %6, %c0_i32_2 : i32
    scf.if %7 {
      %cst = arith.constant 0.000000e+00 : f32
      %8 = vector.broadcast %cst : f32 to vector<256x128xf32>
      %c0 = arith.constant 0 : index
      %c0_3 = arith.constant 0 : index
      %9 = vector.load %arg5[%c0, %c0_3] : memref<256x128xf32, #tpu.memory_space<vmem>>, vector<256x128xf32>
      tpu.vector_store %arg5[%c0, %c0_3], %8 {strides = array<i32>} : memref<256x128xf32, #tpu.memory_space<vmem>>, vector<256x128xf32>,
    } else {
    }
    return
  }
  func.func @transform_0(%arg0: i32, %arg1: memref<3xi32, #tpu.memory_space<smem>>, %arg2: memref<3xi32, #tpu.memory_space<smem>>) -> (i32, i32) {
    %c0_i32 = arith.constant 0 : i32
    %c0_i32_0 = arith.constant 0 : i32
    return %arg0, %c0_i32 : i32, i32
  }
  func.func @transform_1(%arg0: i32, %arg1: memref<3xi32, #tpu.memory_space<smem>>, %arg2: memref<3xi32, #tpu.memory_space<smem>>) -> (i32, i32, i32) {
    %0 = arith.index_cast %arg0 : i32 to index
    %1 = memref.load %arg1[%0] : memref<3xi32, #tpu.memory_space<smem>>
    %c0_i32 = arith.constant 0 : i32
    %c0_i32_0 = arith.constant 0 : i32
    %c0_i32_1 = arith.constant 0 : i32
    return %1, %c0_i32, %c0_i32_0 : i32, i32, i32
  }
  func.func @transform_2(%arg0: i32, %arg1: memref<3xi32, #tpu.memory_space<smem>>, %arg2: memref<3xi32, #tpu.memory_space<smem>>) -> (i32, i32) {
    %c0_i32 = arith.constant 0 : i32
    %c0_i32_0 = arith.constant 0 : i32
    return %arg0, %c0_i32 : i32, i32
  }
}

</mosaic_0001>

<bundles_post_ra>
// kernel: tpu_custom_call.1
= control target key start
LH: loop header
LB: loop body
LE: loop exit
PB: predicated region body
PF: predicated region fallthrough
CT: control target
= control target key end

     0   :  { %s3123_s0 = inlined_call_operand.vmem [shape: s32[3], index: 0, kind: input, shape index: {}]   ;;  %s3124_s2 = inlined_call_operand.vmem [shape: s32[768,2], index: 2, kind: input, shape index: {}]   ;;  %s3125_s3 = inlined_call_operand.vmem [shape: f32[2,32,128], index: 3, kind: input, shape index: {}]   ;;  %s3126_s4 = inlined_call_operand.hbm [shape: f32[768,128], index: 4, kind: output, shape index: {}]   ;;  %s3127_s1 = inlined_call_operand.vmem [shape: s32[3], index: 1, kind: input, shape index: {}]  }
   0x1   :  { %s9_s17 = sshll.u32 %s3123_s0, 4  ;;  %s13_s20 = sshll.u32 %s3127_s1, 4  ;;  %s10_s17 = int_to_ptr.vmem [resolvable:$true] %s9_s17  ;;  %s14_s20 = int_to_ptr.vmem [resolvable:$true] %s13_s20 }
   0x2   :  { %s2035_s21 = scalar_lea.vmem %s10_s17, 16  ;;  %p2040_p1 = scmp.lt.s32.totalorder %s10_s17, %s10_s17 }
   0x3   :  { %p2036_p0 = scmp.ne.s32.totalorder %s10_s17, %s2035_s21  ;;  %p2041_p2 = scmp.lt.s32.totalorder %s2035_s21, %s2035_s21 }
   0x5   :  { %p2042_p3 = por %p2041_p2, %p2040_p1 }
   0x7   :  { %p2043_p4 = pnand %p2042_p3, %p2036_p0 }
   0x9   :  { %2046 = shalt.err (!%p2043_p4)  }
   0xa   :  { %s2125_s22 = smov [#allocation3]   ;;  %s2047_s23 = scalar_lea.vmem %s14_s20, 16 }
   0xb   :  { %12 = dma.vmem_to_smem %s10_s17, 16, %s2125_s22, [#allocation2] }
   0xc   :  { %p2048_p5 = scmp.ne.s32.totalorder %s14_s20, %s2047_s23  ;;  %p2052_p6 = scmp.lt.s32.totalorder %s14_s20, %s14_s20 }
   0xd   :  { %p2053_p7 = scmp.lt.s32.totalorder %s2047_s23, %s2047_s23 }
   0xf   :  { %p2054_p8 = por %p2053_p7, %p2052_p6 }
  0x11   :  { %p2055_p9 = pnand %p2054_p8, %p2048_p5 }
  0x13   :  { %2058 = shalt.err (!%p2055_p9)  }
  0x14   :  { %s2126_s0 = smov [#allocation4]  }
  0x15   :  { %16 = dma.vmem_to_smem %s14_s20, 16, %s2126_s0, [#allocation2] }
  0x16   :  { %2103 = dma.done.wait [#allocation2], 32 }
  0x17   :  { %2104 = vsyncadd [#allocation2], 4294967264 }
  0x18   :  { %18 = sfence }
  0x19   :  { %19 = vsyncpa [#allocation6], 0 }
  0x1a   :  { %21 = vsyncpa [#allocation6 + $0x1], 0  ;;  %s2166_s1 = smov 0   ;;  %s2168_s24 = smov 0  }
  0x1b   :  { %s2170_s25 = smov 0   ;;  %s2172_s26 = smov 0  }
  0x1c LB: > { %s2187_s27 = sadd.s32 4294967295, %s2123_s26   ;;  %s1679_s28 = sadd.s32 4294967294, %s2123_s26   ;;  %s2123_s26 = sphi %s2172_s26, %s3133_s26   ;;  %s2119_s25 = sphi %s2170_s25, %s3132_s25   ;;  %s2115_s24 = sphi %s2168_s24, %s3131_s24   ;;  %s2111_s1 = sphi %s2166_s1, %s3130_s1  }
  0x1d   : > { %s2191_s29 = sadd.s32 1, %s2123_s26   ;;  %s88_s30 = sadd.s32 1, %s2119_s25 }
  0x1e   : > { %s85_s5 = ssub.s32 %s2123_s26, %s2191_s29  ;;  %p98_p10 = scmp.ne.s32.totalorder %s2119_s25, %s2115_s24 }
  0x1f   : > { %p86_p11 = scmp.eq.s32.totalorder %s85_s5, 0  ;;  %p99_p12 = scmp.eq.s32.totalorder %s2187_s27, 2 }
  0x20   : > { %p104_p13 = scmp.ne.s32.totalorder %s2115_s24, %s2111_s1  ;;  %p105_p0 = scmp.eq.s32.totalorder %s1679_s28, 2 }
  0x21   : > { %s2202_s6 = scalar_select %p86_p11, %s2119_s25, %s88_s30  }
  0x22   : > { %p2204_p1 = por %p99_p12, %p98_p10  ;;  %p2208_p2 = por %p105_p0, %p104_p13 }
  0x23   : > { %p1682_p3 = scmp.ge.s32.totalorder %s2123_s26, 1  ;;  %p142_p4 = scmp.lt.s32.totalorder %s2123_s26, 4 }
  0x25   : > { %p143_p5 = pnand %p1682_p3, %p142_p4 }
  0x26   : > { %s167_s9 = sand.u32 (!%p143_p5), 1, %s2115_s24   ;;  %s1684_s10 = sshll.u32 (!%p143_p5), %s2187_s27, 5 }
  0x27   : > { %146 = sbr.rel (%p143_p5) target bundleno = 586 (0x24a), region = 28  ;;  %s1683_s11 = sshll.u32 (!%p143_p5), %s167_s9, 8 }
  0x28   : > { %p171_p6 = scmp.lt.s32.totalorder (!%p143_p5), %s1684_s10, 95  ;;  %s176_s12 = sld [smem:[#allocation3 + %s2187_s27]] (!%p143_p5) }
  0x29   : > { %s2220_s13 = sld [smem:[#allocation4 + %s2187_s27]] (!%p143_p5)  ;;  %s2232_s22 = scalar_lea.vmem (!%p143_p5), [#allocation5], %s1683_s11 }
  0x2e   : > { %s3135_s10 = smov (!%p171_p6, %s1684_s10), 95  ;;  %p177_p7 = scmp.lt.s32.totalorder %s176_s12, 1 }
  0x2f   : > { %s1685_s14 = sshll.u32 %s3135_s10, 3  ;;  %p1688_p8 = scmp.eq.s32.totalorder %s2220_s13, 0 }
  0x30   : > { %s2225_s17 = scalar_lea.vmem %s3124_s2, %s1685_s14  ;;  %s3137_s12 = smov (!%p177_p7, %s176_s12), 1  ;;  %v2127_v2 = vmov (!%p1688_p8), 0   ;;  %v2128_v6 = vmov (!%p1688_p8), 1   ;;  %vm608_vm8 = vcmask (!%p1688_p8), 261120  }
  0x31   : > { %s1759_s18 = sshll.u32 %s3137_s12, 5  ;;  %189 = sbr.rel (%p1688_p8) target bundleno = 543 (0x21f), region = 32  ;;  %v2236_v0 = vld [vmem:[%s2225_s17 + $0x10] sm:$0xff] (!%p1688_p8)  ;;  %v2239_v1 = vld [vmem:[%s2225_s17] sm:$0xff] (!%p1688_p8)  ;;  %1950 = vset.pattern.permute.xlu1 (!%p1688_p8), %v2127_v2  ;;  %1949 = vset.pattern.permute.xlu0 (!%p1688_p8), %v2127_v2  ;;  %v2246_v3 = vld [vmem:[%s2225_s17 + $0x18] sm:$0xff] (!%p1688_p8) }
  0x32   : > { %s2230_s21 = scalar_lea.vmem %s3125_s3, %s1759_s18  ;;  %235 = vperm.xlu1 (!%p1688_p8), %1950, %v2236_v0   ;;  %229 = vperm.xlu0 (!%p1688_p8), %1949, %v2239_v1   ;;  %v2249_v4 = vld [vmem:[%s2225_s17 + $0x8] sm:$0xff] (!%p1688_p8)  ;;  %v2260_v7 = vld [vmem:[%s2225_s17 + $0x38] sm:$0xff] (!%p1688_p8)  ;;  %v2319_v33 = vld [vmem:[%s2225_s17 + $0x20] sm:$0xff] (!%p1688_p8)  ;;  %s2129_s23 = smov (!%p1688_p8), 1  }
  0x33   : > { %v2254_v5 = vld [vmem:[%s2225_s17 + $0x28] sm:$0xff] (!%p1688_p8)  ;;  %v2270_v9 = vld [vmem:[%s2225_s17 + $0x58] sm:$0xff] (!%p1688_p8)  ;;  %v222_v17 = vld [vmem:[%s2230_s21] sm:$0xff] (!%p1688_p8) }
  0x34   : > { %v2265_v8 = vld [vmem:[%s2225_s17 + $0x48] sm:$0xff] (!%p1688_p8)  ;;  %v2280_v11 = vld [vmem:[%s2225_s17 + $0x78] sm:$0xff] (!%p1688_p8)  ;;  %v224_v22 = vld [vmem:[%s2230_s21 + $0x10] sm:$0xff] (!%p1688_p8) }
  0x35   : > { %v2275_v10 = vld [vmem:[%s2225_s17 + $0x68] sm:$0xff] (!%p1688_p8)  ;;  %v2290_v13 = vld [vmem:[%s2225_s17 + $0x98] sm:$0xff] (!%p1688_p8)  ;;  %v2322_v34 = vld [vmem:[%s2225_s17 + $0xe0] sm:$0xff] (!%p1688_p8) }
  0x36   : > { %238 = vperm.xlu1 (!%p1688_p8), %1950, %v2246_v3   ;;  %232 = vperm.xlu0 (!%p1688_p8), %1949, %v2249_v4   ;;  %v2285_v12 = vld [vmem:[%s2225_s17 + $0x88] sm:$0xff] (!%p1688_p8)  ;;  %v2300_v15 = vld [vmem:[%s2225_s17 + $0xb8] sm:$0xff] (!%p1688_p8)  ;;  %v2327_v35 = vld [vmem:[%s2225_s17 + $0x30] sm:$0xff] (!%p1688_p8) }
  0x37   : > { %v2295_v14 = vld [vmem:[%s2225_s17 + $0xa8] sm:$0xff] (!%p1688_p8)  ;;  %v225_v23 = vld [vmem:[%s2230_s21 + $0x18] sm:$0xff] (!%p1688_p8)  ;;  %v2333_v36 = vld [vmem:[%s2225_s17 + $0x40] sm:$0xff] (!%p1688_p8) }
  0x38   : > { %v2305_v16 = vld [vmem:[%s2225_s17 + $0xc8] sm:$0xff]  ;;  %v597_v26 = vpack.c.bf16 %v225_v23, %v224_v22  ;;  %v2338_v37 = vld [vmem:[%s2225_s17 + $0x50] sm:$0xff]  ;;  %v2343_v38 = vld [vmem:[%s2225_s17 + $0x60] sm:$0xff] }
  0x39   : > { %v223_v18 = vld [vmem:[%s2230_s21 + $0x8] sm:$0xff]  ;;  %v2348_v39 = vld [vmem:[%s2225_s17 + $0x70] sm:$0xff]  ;;  %v2353_v40 = vld [vmem:[%s2225_s17 + $0x80] sm:$0xff] }
  0x3a   : > { %244 = vperm.xlu1 %1950, %v2254_v5   ;;  %1951 = vset.pattern.permute.xlu0 %v2128_v6  ;;  %v596_v19 = vpack.c.bf16 %v223_v18, %v222_v17  ;;  %v600_v28 = vunpack.c.l.bf16 %v597_v26  ;;  %v601_v29 = vunpack.c.h.bf16 %v597_v26  ;;  %v2358_v41 = vld [vmem:[%s2225_s17 + $0x90] sm:$0xff]  ;;  %v2363_v42 = vld [vmem:[%s2225_s17 + $0xa0] sm:$0xff]  ;;  %v2384_v46 = vld [vmem:[%s2225_s17 + $0xd8] sm:$0xff] }
  0x3b   : > { %357 = vperm.xlu0 %1951, %v2239_v1   ;;  %v2368_v43 = vld [vmem:[%s2225_s17 + $0xb0] sm:$0xff]  ;;  %v2373_v44 = vld [vmem:[%s2225_s17 + $0xc0] sm:$0xff]  ;;  %v2392_v47 = vld [vmem:[%s2225_s17 + $0xf8] sm:$0xff] }
  0x3c   : > { %v598_v20 = vunpack.c.l.bf16 %v596_v19  ;;  %v599_v21 = vunpack.c.h.bf16 %v596_v19  ;;  %1833 = vmatprep.subr.bf16.mxu0 %v596_v19  ;;  %v604_v30 = vsub.f32 %v224_v22, %v600_v28  ;;  %v605_v31 = vsub.f32 %v225_v23, %v601_v29  ;;  %v2378_v45 = vld [vmem:[%s2225_s17 + $0xd0] sm:$0xff]  ;;  %v2395_v48 = vld [vmem:[%s2225_s17 + $0xe8] sm:$0xff] }
  0x3d   : > { %1834 = vmatpush3.bf16.msra.mxu0 %v596_v19  ;;  %v2410_v51 = vld [vmem:[%s2225_s17 + $0xf0] sm:$0xff]  ;;  %v226_v23 = vlaneseq }
  0x3e   : > { %250 = vperm.xlu1 %1950, %v2260_v7   ;;  %v602_v24 = vsub.f32 %v222_v17, %v598_v20  ;;  %v603_v25 = vsub.f32 %v223_v18, %v599_v21  ;;  %1835 = vmatprep.subr.bf16.mxu0 %v597_v26  ;;  %v607_v32 = vpack.c.bf16 %v605_v31, %v604_v30 }
  0x3f   : > { %366 = vperm.xlu0 %1951, %v2246_v3  }
  0x40   : > { %v606_v27 = vpack.c.bf16 %v603_v25, %v602_v24 }
  0x41   : > { %1836 = vmatpush3.bf16.msra.mxu0 %v597_v26  ;;  %v2495_v26 = vand.u32 127, %v226_v23 }
  0x42   : > { %256 = vperm.xlu1 %1950, %v2265_v8   ;;  %1797 = vmatprep.subr.bf16.mxu1 %v606_v27 }
  0x43   : > { %372 = vperm.xlu0 %1951, %v2254_v5   ;;  %1798 = vmatpush3.bf16.msra.mxu1 %v606_v27 }
  0x44   : > { %1799 = vmatprep.subr.bf16.mxu1 %v607_v32 }
  0x46   : > { %262 = vperm.xlu1 %1950, %v2270_v9  }
  0x47   : > { %378 = vperm.xlu0 %1951, %v2260_v7   ;;  %1800 = vmatpush3.bf16.msra.mxu1 %v607_v32 }
  0x4a   : > { %268 = vperm.xlu1 %1950, %v2275_v10  }
  0x4b   : > { %384 = vperm.xlu0 %1951, %v2265_v8  }
  0x4e   : > { %274 = vperm.xlu1 %1950, %v2280_v11  }
  0x4f   : > { %390 = vperm.xlu0 %1951, %v2270_v9  }
  0x52   : > { %280 = vperm.xlu1 %1950, %v2285_v12  }
  0x53   : > { %396 = vperm.xlu0 %1951, %v2275_v10  }
  0x56   : > { %286 = vperm.xlu1 %1950, %v2290_v13  }
  0x57   : > { %402 = vperm.xlu0 %1951, %v2280_v11  }
  0x5a   : > { %292 = vperm.xlu1 %1950, %v2295_v14  }
  0x5b   : > { %408 = vperm.xlu0 %1951, %v2285_v12  }
  0x5e   : > { %298 = vperm.xlu1 %1950, %v2300_v15  }
  0x5f   : > { %414 = vperm.xlu0 %1951, %v2290_v13  }
  0x62   : > { %304 = vperm.xlu1 %1950, %v2305_v16  }
  0x63   : > { %420 = vperm.xlu0 %1951, %v2295_v14  }
  0x66   : > { %1952 = vset.pattern.permute.xlu1 %v2128_v6 }
  0x67   : > { %360 = vperm.xlu1 %1952, %v2249_v4   ;;  %426 = vperm.xlu0 %1951, %v2300_v15  }
  0x6b   : > { %363 = vperm.xlu1 %1952, %v2236_v0   ;;  %432 = vperm.xlu0 %1951, %v2305_v16  }
  0x6f   : > { %369 = vperm.xlu1 %1952, %v2319_v33   ;;  %441 = vperm.xlu0 %1951, %v2322_v34  }
  0x73   : > { %375 = vperm.xlu1 %1952, %v2327_v35   ;;  %1956 = vset.pattern.permute.xlu0 %v2127_v2 }
  0x74   : > { %241 = vperm.xlu0 %1956, %v2319_v33  }
  0x77   : > { %381 = vperm.xlu1 %1952, %v2333_v36  }
  0x78   : > { %247 = vperm.xlu0 %1956, %v2327_v35  }
  0x7b   : > { %387 = vperm.xlu1 %1952, %v2338_v37  }
  0x7c   : > { %253 = vperm.xlu0 %1956, %v2333_v36  }
  0x7f   : > { %393 = vperm.xlu1 %1952, %v2343_v38  }
  0x80   : > { %259 = vperm.xlu0 %1956, %v2338_v37  }
  0x83   : > { %399 = vperm.xlu1 %1952, %v2348_v39  }
  0x84   : > { %265 = vperm.xlu0 %1956, %v2343_v38  }
  0x87   : > { %405 = vperm.xlu1 %1952, %v2353_v40  }
  0x88   : > { %271 = vperm.xlu0 %1956, %v2348_v39  }
  0x8b   : > { %411 = vperm.xlu1 %1952, %v2358_v41  }
  0x8c   : > { %277 = vperm.xlu0 %1956, %v2353_v40  }
  0x8f   : > { %417 = vperm.xlu1 %1952, %v2363_v42  }
  0x90   : > { %283 = vperm.xlu0 %1956, %v2358_v41  }
  0x93   : > { %423 = vperm.xlu1 %1952, %v2368_v43  }
  0x94   : > { %289 = vperm.xlu0 %1956, %v2363_v42  }
  0x97   : > { %429 = vperm.xlu1 %1952, %v2373_v44  }
  0x98   : > { %295 = vperm.xlu0 %1956, %v2368_v43  }
  0x9b   : > { %1953 = vset.pattern.permute.xlu1 %v2127_v2 }
  0x9c   : > { %307 = vperm.xlu1 %1953, %v2378_v45   ;;  %301 = vperm.xlu0 %1956, %v2373_v44  }
  0xa0   : > { %1954 = vset.pattern.permute.xlu1 %v2128_v6  ;;  %310 = vperm.xlu0 %1956, %v2384_v46  }
  0xa1   : > { %435 = vperm.xlu1 %1954, %v2378_v45  }
  0xa4   : > { %313 = vperm.xlu0 %1956, %v2322_v34  }
  0xa5   : > { %438 = vperm.xlu1 %1954, %v2384_v46  }
  0xa8   : > { %322 = vperm.xlu0 %1956, %v2392_v47  }
  0xa9   : > { %1955 = vset.pattern.permute.xlu1 %v2127_v2 }
  0xaa   : > { %316 = vperm.xlu1 %1955, %v2395_v48  }
  0xac   : > { %979 = vrot.lane.b32.xlu0 %v2239_v1, %s2129_s23 }
  0xad   : > { %1960 = vset.pattern.permute.xlu0 %v2128_v6 }
  0xae   : > { %1957 = vset.pattern.permute.xlu1 %v2128_v6 }
  0xaf   : > { %444 = vperm.xlu1 %1957, %v2395_v48  }
  0xb0   : > { %983 = vrot.lane.b32.xlu0 %v2236_v0, %s2129_s23 }
  0xb1   : > { %v2407_v49 = vpop.permute.xlu1 %235  ;;  %v230_v50 = vpop.permute.xlu0 %229 }
  0xb2   : > { %vm324_vm0 = vcmp.ge.s32.totalorder %v2495_v26, %v230_v50  ;;  %vm326_vm10 = vcmp.ge.s32.totalorder %v2495_v26, %v2407_v49 }
  0xb3   : > { %1958 = vset.pattern.permute.xlu1 %v2127_v2 }
  0xb4   : > { %319 = vperm.xlu1 %1958, %v2410_v51   ;;  %987 = vrot.lane.b32.xlu0 %v2319_v33, %s2129_s23 }
  0xb5   : > { %v2416_v52 = vpop.permute.xlu1 %238  ;;  %v233_v53 = vpop.permute.xlu0 %232 }
  0xb6   : > { %vm325_vm3 = vcmp.ge.s32.totalorder %v2495_v26, %v233_v53  ;;  %vm327_vm7 = vcmp.ge.s32.totalorder %v2495_v26, %v2416_v52 }
  0xb8   : > { %1959 = vset.pattern.permute.xlu1 %v2128_v6  ;;  %991 = vrot.lane.b32.xlu0 %v2327_v35, %s2129_s23 }
  0xb9   : > { %v2421_v54 = vpop.permute.xlu1 %244  ;;  %447 = vperm.xlu1 %1959, %v2410_v51  }
  0xba   : > { %v358_v55 = vpop.permute.xlu0 %357  ;;  %vm329_vm14 = vcmp.ge.s32.totalorder %v2495_v26, %v2421_v54 }
  0xbb   : > { %vm452_vm1 = vcmp.lt.s32.totalorder %v2495_v26, %v358_v55 }
  0xbc   : > { %995 = vrot.lane.b32.xlu0 %v2333_v36, %s2129_s23  ;;  %vm484_vm2 = vmand %vm324_vm0, %vm452_vm1 }
  0xbd   : > { %v2426_v56 = vpop.permute.xlu1 %250  ;;  %450 = vperm.xlu1 %1959, %v2392_v47  }
  0xbe   : > { %v367_v57 = vpop.permute.xlu0 %366 }
  0xbf   : > { %vm455_vm4 = vcmp.lt.s32.totalorder %v2495_v26, %v367_v57 }
  0xc0   : > { %999 = vrot.lane.b32.xlu0 %v2338_v37, %s2129_s23  ;;  %vm487_vm9 = vmand %vm327_vm7, %vm455_vm4  ;;  %vm331_vm4 = vcmp.ge.s32.totalorder %v2495_v26, %v2426_v56 }
  0xc1   : > { %v2431_v58 = vpop.permute.xlu1 %256  ;;  %981 = vrot.lane.b32.xlu1 %v2249_v4, %s2129_s23 }
  0xc2   : > { %v2435_v59 = vpop.permute.xlu0 %372 }
  0xc3   : > { %vm457_vm13 = vcmp.lt.s32.totalorder %v2495_v26, %v2435_v59 }
  0xc4   : > { %1003 = vrot.lane.b32.xlu0 %v2343_v38, %s2129_s23  ;;  %vm489_vm15 = vmand %vm329_vm14, %vm457_vm13 }
  0xc5   : > { %v2439_v60 = vpop.permute.xlu1 %262  ;;  %985 = vrot.lane.b32.xlu1 %v2246_v3, %s2129_s23 }
  0xc6   : > { %v2443_v61 = vpop.permute.xlu0 %378 }
  0xc7   : > { %vm459_vm0 = vcmp.lt.s32.totalorder %v2495_v26, %v2443_v61 }
  0xc8   : > { %1007 = vrot.lane.b32.xlu0 %v2348_v39, %s2129_s23 }
  0xc9   : > { %v2447_v62 = vpop.permute.xlu1 %268  ;;  %989 = vrot.lane.b32.xlu1 %v2254_v5, %s2129_s23 }
  0xca   : > { %v2451_v63 = vpop.permute.xlu0 %384 }
  0xcc   : > { %1011 = vrot.lane.b32.xlu0 %v2353_v40, %s2129_s23 }
  0xcd   : > { %v2455_v2 = vpop.permute.xlu1 %274  ;;  %993 = vrot.lane.b32.xlu1 %v2260_v7, %s2129_s23 }
  0xce   : > { %v2459_v6 = vpop.permute.xlu0 %390 }
  0xcf   : > { %vm463_vm13 = vcmp.lt.s32.totalorder %v2495_v26, %v2459_v6 }
  0xd0   : > { %1015 = vrot.lane.b32.xlu0 %v2358_v41, %s2129_s23 }
  0xd1   : > { %v2463_v17 = vpop.permute.xlu1 %280  ;;  %997 = vrot.lane.b32.xlu1 %v2265_v8, %s2129_s23 }
  0xd2   : > { %v2467_v18 = vpop.permute.xlu0 %396 }
  0xd4   : > { %1019 = vrot.lane.b32.xlu0 %v2363_v42, %s2129_s23 }
  0xd5   : > { %v2471_v19 = vpop.permute.xlu1 %286  ;;  %1001 = vrot.lane.b32.xlu1 %v2270_v9, %s2129_s23 }
  0xd6   : > { %v2475_v20 = vpop.permute.xlu0 %402 }
  0xd8   : > { %1023 = vrot.lane.b32.xlu0 %v2368_v43, %s2129_s23 }
  0xd9   : > { %v2479_v21 = vpop.permute.xlu1 %292  ;;  %1005 = vrot.lane.b32.xlu1 %v2275_v10, %s2129_s23 }
  0xda   : > { %v2483_v22 = vpop.permute.xlu0 %408 }
  0xdc   : > { %1027 = vrot.lane.b32.xlu0 %v2373_v44, %s2129_s23 }
  0xdd   : > { %v2487_v24 = vpop.permute.xlu1 %298  ;;  %1009 = vrot.lane.b32.xlu1 %v2280_v11, %s2129_s23 }
  0xde   : > { %v2491_v25 = vpop.permute.xlu0 %414 }
  0xe0   : > { %1031 = vrot.lane.b32.xlu0 %v2378_v45, %s2129_s23 }
  0xe1   : > { %v2497_v27 = vpop.permute.xlu1 %304  ;;  %1013 = vrot.lane.b32.xlu1 %v2285_v12, %s2129_s23  ;;  %v2130_v12 = vmov 0.0  }
  0xe2   : > { %v2501_v28 = vpop.permute.xlu0 %420  ;;  %v1692_v50 = vsel %vm487_vm9, 1.0, %v2130_v12 }
  0xe4   : > { %1035 = vrot.lane.b32.xlu0 %v2322_v34, %s2129_s23 }
  0xe5   : > { %1017 = vrot.lane.b32.xlu1 %v2290_v13, %s2129_s23  ;;  %v1689_v13 = vsel %vm484_vm2, 1.0, %v2130_v12 }
  0xe6   : > { %v361_v11 = vpop.permute.xlu1 %360  ;;  %v2509_v29 = vpop.permute.xlu0 %426 }
  0xe7   : > { %vm453_vm5 = vcmp.lt.s32.totalorder %v2495_v26, %v361_v11 }
  0xe8   : > { %vm485_vm6 = vmand %vm325_vm3, %vm453_vm5  ;;  %1039 = vrot.lane.b32.xlu0 %v2410_v51, %s2129_s23 }
  0xe9   : > { %v1690_v30 = vsel %vm485_vm6, 1.0, %v2130_v12  ;;  %1021 = vrot.lane.b32.xlu1 %v2295_v14, %s2129_s23  ;;  %vm491_vm5 = vmand %vm331_vm4, %vm459_vm0  ;;  %vm461_vm6 = vcmp.lt.s32.totalorder %v2495_v26, %v2451_v63 }
  0xea   : > { %v364_v31 = vpop.permute.xlu1 %363  ;;  %v2522_v32 = vpop.permute.xlu0 %432  ;;  %v580_v34 = vpack.c.bf16 %v1690_v30, %v1689_v13 }
  0xeb   : > { %vm454_vm11 = vcmp.lt.s32.totalorder %v2495_v26, %v364_v31 }
  0xec   : > { %vm486_vm12 = vmand %vm326_vm10, %vm454_vm11  ;;  %1801 = vmatprep.mubr.msk.bf16.mxu1 %vm608_vm8, %v580_v34  ;;  %1837 = vmatprep.mubr.msk.bf16.mxu0 %vm608_vm8, %v580_v34  ;;  %vm333_vm11 = vcmp.ge.s32.totalorder %v2495_v26, %v2431_v58 }
  0xed   : > { %v1691_v52 = vsel %vm486_vm12, 1.0, %v2130_v12  ;;  %1025 = vrot.lane.b32.xlu1 %v2300_v15, %s2129_s23  ;;  %vm493_vm12 = vmand %vm333_vm11, %vm461_vm6 }
  0xee   : > { %v581_v14 = vpack.c.bf16 %v1692_v50, %v1691_v52  ;;  %v370_v53 = vpop.permute.xlu1 %369  ;;  %v2533_v55 = vpop.permute.xlu0 %441 }
  0xef   : > { %vm456_vm1 = vcmp.lt.s32.totalorder %v2495_v26, %v370_v53 }
  0xf0   : > { %1802 = vmatmul.mubr.msk.bf16.vlgmr.msra.gmra.mrb[0].mxu1 %vm608_vm8, %v581_v14  ;;  %1838 = vmatmul.mubr.msk.bf16.vlgmr.msra.gmra.mrb[0].mxu0 %vm608_vm8, %v581_v14 }
  0xf1   : > { %1029 = vrot.lane.b32.xlu1 %v2305_v16, %s2129_s23  ;;  %v1694_v16 = vsel %vm489_vm15, 1.0, %v2130_v12 }
  0xf2   : > { %v376_v49 = vpop.permute.xlu1 %375 }
  0xf3   : > { %v242_v15 = vpop.permute.xlu0 %241  ;;  %vm458_vm7 = vcmp.lt.s32.totalorder %v2495_v26, %v376_v49 }
  0xf4   : > { %vm328_vm2 = vcmp.ge.s32.totalorder %v2495_v26, %v242_v15 }
  0xf5   : > { %vm488_vm3 = vmand %vm328_vm2, %vm456_vm1  ;;  %1033 = vrot.lane.b32.xlu1 %v2384_v46, %s2129_s23  ;;  %v1696_v46 = vsel %vm491_vm5, 1.0, %v2130_v12  ;;  %vm335_vm1 = vcmp.ge.s32.totalorder %v2495_v26, %v2439_v60 }
  0xf6   : > { %v1693_v54 = vsel %vm488_vm3, 1.0, %v2130_v12  ;;  %v382_v57 = vpop.permute.xlu1 %381  ;;  %vm495_vm2 = vmand %vm335_vm1, %vm463_vm13  ;;  %vm465_vm3 = vcmp.lt.s32.totalorder %v2495_v26, %v2467_v18 }
  0xf7   : > { %v582_v59 = vpack.c.bf16 %v1694_v16, %v1693_v54  ;;  %v248_v23 = vpop.permute.xlu0 %247  ;;  %vm460_vm14 = vcmp.lt.s32.totalorder %v2495_v26, %v382_v57 }
  0xf8   : > { %vm330_vm9 = vcmp.ge.s32.totalorder %v2495_v26, %v248_v23 }
  0xf9   : > { %vm490_vm10 = vmand %vm330_vm9, %vm458_vm7  ;;  %1805 = vmatprep.mubr.msk.bf16.mxu1 %vm608_vm8, %v582_v59  ;;  %1841 = vmatprep.mubr.msk.bf16.mxu0 %vm608_vm8, %v582_v59  ;;  %vm337_vm7 = vcmp.ge.s32.totalorder %v2495_v26, %v2447_v62 }
  0xfa   : > { %v1695_v56 = vsel %vm490_vm10, 1.0, %v2130_v12  ;;  %v388_v61 = vpop.permute.xlu1 %387  ;;  %1037 = vrot.lane.b32.xlu1 %v2395_v48, %s2129_s23  ;;  %v1698_v48 = vsel %vm493_vm12, 1.0, %v2130_v12  ;;  %vm497_vm9 = vmand %vm337_vm7, %vm465_vm3  ;;  %vm467_vm10 = vcmp.lt.s32.totalorder %v2495_v26, %v2475_v20 }
  0xfb   : > { %v583_v63 = vpack.c.bf16 %v1696_v46, %v1695_v56  ;;  %v254_v11 = vpop.permute.xlu0 %253  ;;  %vm462_vm4 = vcmp.lt.s32.totalorder %v2495_v26, %v388_v61  ;;  %v1702_v62 = vsel %vm497_vm9, 1.0, %v2130_v12 }
  0xfc   : > { %vm332_vm15 = vcmp.ge.s32.totalorder %v2495_v26, %v254_v11 }
  0xfd   : > { %vm492_vm0 = vmand %vm332_vm15, %vm460_vm14  ;;  %1806 = vmatmul.mubr.msk.bf16.gmra.mrb[4].mxu1 %vm608_vm8, %v583_v63  ;;  %1842 = vmatmul.mubr.msk.bf16.gmra.mrb[4].mxu0 %vm608_vm8, %v583_v63  ;;  %vm339_vm14 = vcmp.ge.s32.totalorder %v2495_v26, %v2455_v2 }
  0xfe   : > { %v1697_v58 = vsel %vm492_vm0, 1.0, %v2130_v12  ;;  %v394_v13 = vpop.permute.xlu1 %393  ;;  %1041 = vrot.lane.b32.xlu1 %v2392_v47, %s2129_s23  ;;  %v1700_v47 = vsel %vm495_vm2, 1.0, %v2130_v12  ;;  %vm499_vm15 = vmand %vm339_vm14, %vm467_vm10  ;;  %vm469_vm0 = vcmp.lt.s32.totalorder %v2495_v26, %v2483_v22 }
  0xff   : > { %v584_v6 = vpack.c.bf16 %v1698_v48, %v1697_v58  ;;  %v260_v30 = vpop.permute.xlu0 %259  ;;  %vm464_vm11 = vcmp.lt.s32.totalorder %v2495_v26, %v394_v13  ;;  %v1704_v2 = vsel %vm499_vm15, 1.0, %v2130_v12 }
 0x100   : > { %vm334_vm5 = vcmp.ge.s32.totalorder %v2495_v26, %v260_v30 }
 0x101   : > { %vm494_vm6 = vmand %vm334_vm5, %vm462_vm4  ;;  %1809 = vmatprep.mubr.msk.bf16.mxu1 %vm608_vm8, %v584_v6  ;;  %1845 = vmatprep.mubr.msk.bf16.mxu0 %vm608_vm8, %v584_v6  ;;  %vm341_vm4 = vcmp.ge.s32.totalorder %v2495_v26, %v2463_v17 }
 0x102   : > { %v1699_v60 = vsel %vm494_vm6, 1.0, %v2130_v12  ;;  %v400_v31 = vpop.permute.xlu1 %399  ;;  %vm501_vm5 = vmand %vm341_vm4, %vm469_vm0  ;;  %vm471_vm6 = vcmp.lt.s32.totalorder %v2495_v26, %v2491_v25 }
 0x103   : > { %v585_v34 = vpack.c.bf16 %v1700_v47, %v1699_v60  ;;  %v266_v18 = vpop.permute.xlu0 %265  ;;  %vm466_vm1 = vcmp.lt.s32.totalorder %v2495_v26, %v400_v31  ;;  %v1706_v17 = vsel %vm501_vm5, 1.0, %v2130_v12 }
 0x104   : > { %vm336_vm12 = vcmp.ge.s32.totalorder %v2495_v26, %v266_v18 }
 0x105   : > { %vm496_vm13 = vmand %vm336_vm12, %vm464_vm11  ;;  %1810 = vmatmul.mubr.msk.bf16.gmra.mrb[8].mxu1 %vm608_vm8, %v585_v34  ;;  %1846 = vmatmul.mubr.msk.bf16.gmra.mrb[8].mxu0 %vm608_vm8, %v585_v34  ;;  %vm343_vm11 = vcmp.ge.s32.totalorder %v2495_v26, %v2471_v19 }
 0x106   : > { %v1701_v50 = vsel %vm496_vm13, 1.0, %v2130_v12  ;;  %v406_v52 = vpop.permute.xlu1 %405  ;;  %vm503_vm12 = vmand %vm343_vm11, %vm471_vm6  ;;  %vm473_vm13 = vcmp.lt.s32.totalorder %v2495_v26, %v2501_v28 }
 0x107   : > { %v586_v14 = vpack.c.bf16 %v1702_v62, %v1701_v50  ;;  %v272_v20 = vpop.permute.xlu0 %271  ;;  %vm468_vm7 = vcmp.lt.s32.totalorder %v2495_v26, %v406_v52  ;;  %v1708_v19 = vsel %vm503_vm12, 1.0, %v2130_v12 }
 0x108   : > { %vm338_vm2 = vcmp.ge.s32.totalorder %v2495_v26, %v272_v20 }
 0x109   : > { %vm498_vm3 = vmand %vm338_vm2, %vm466_vm1  ;;  %1813 = vmatprep.mubr.msk.bf16.mxu1 %vm608_vm8, %v586_v14  ;;  %1849 = vmatprep.mubr.msk.bf16.mxu0 %vm608_vm8, %v586_v14  ;;  %vm345_vm1 = vcmp.ge.s32.totalorder %v2495_v26, %v2479_v21 }
 0x10a   : > { %v1703_v53 = vsel %vm498_vm3, 1.0, %v2130_v12  ;;  %v412_v49 = vpop.permute.xlu1 %411  ;;  %vm505_vm2 = vmand %vm345_vm1, %vm473_vm13  ;;  %vm475_vm3 = vcmp.lt.s32.totalorder %v2495_v26, %v2509_v29 }
 0x10b   : > { %v587_v15 = vpack.c.bf16 %v1704_v2, %v1703_v53  ;;  %v278_v22 = vpop.permute.xlu0 %277  ;;  %vm470_vm14 = vcmp.lt.s32.totalorder %v2495_v26, %v412_v49  ;;  %v1710_v21 = vsel %vm505_vm2, 1.0, %v2130_v12 }
 0x10c   : > { %vm340_vm9 = vcmp.ge.s32.totalorder %v2495_v26, %v278_v22 }
 0x10d   : > { %vm500_vm10 = vmand %vm340_vm9, %vm468_vm7  ;;  %1814 = vmatmul.mubr.msk.bf16.gmra.mrb[12].mxu1 %vm608_vm8, %v587_v15  ;;  %1850 = vmatmul.mubr.msk.bf16.gmra.mrb[12].mxu0 %vm608_vm8, %v587_v15  ;;  %vm347_vm7 = vcmp.ge.s32.totalorder %v2495_v26, %v2487_v24 }
 0x10e   : > { %v1705_v16 = vsel %vm500_vm10, 1.0, %v2130_v12  ;;  %v418_v54 = vpop.permute.xlu1 %417  ;;  %vm507_vm9 = vmand %vm347_vm7, %vm475_vm3  ;;  %vm477_vm10 = vcmp.lt.s32.totalorder %v2495_v26, %v2522_v32 }
 0x10f   : > { %v588_v57 = vpack.c.bf16 %v1706_v17, %v1705_v16  ;;  %v284_v25 = vpop.permute.xlu0 %283  ;;  %vm472_vm4 = vcmp.lt.s32.totalorder %v2495_v26, %v418_v54  ;;  %v1712_v24 = vsel %vm507_vm9, 1.0, %v2130_v12 }
 0x110   : > { %vm342_vm15 = vcmp.ge.s32.totalorder %v2495_v26, %v284_v25 }
 0x111   : > { %vm502_vm0 = vmand %vm342_vm15, %vm470_vm14  ;;  %1817 = vmatprep.mubr.msk.bf16.mxu1 %vm608_vm8, %v588_v57  ;;  %1853 = vmatprep.mubr.msk.bf16.mxu0 %vm608_vm8, %v588_v57  ;;  %vm349_vm14 = vcmp.ge.s32.totalorder %v2495_v26, %v2497_v27 }
 0x112   : > { %v1707_v59 = vsel %vm502_vm0, 1.0, %v2130_v12  ;;  %v424_v23 = vpop.permute.xlu1 %423  ;;  %vm509_vm15 = vmand %vm349_vm14, %vm477_vm10 }
 0x113   : > { %v589_v46 = vpack.c.bf16 %v1708_v19, %v1707_v59  ;;  %v290_v28 = vpop.permute.xlu0 %289  ;;  %vm474_vm11 = vcmp.lt.s32.totalorder %v2495_v26, %v424_v23  ;;  %v1714_v13 = vsel %vm509_vm15, 1.0, %v2130_v12 }
 0x114   : > { %vm344_vm5 = vcmp.ge.s32.totalorder %v2495_v26, %v290_v28 }
 0x115   : > { %vm504_vm6 = vmand %vm344_vm5, %vm472_vm4  ;;  %1818 = vmatmul.mubr.msk.bf16.gmra.mrb[16].mxu1 %vm608_vm8, %v589_v46  ;;  %1854 = vmatmul.mubr.msk.bf16.gmra.mrb[16].mxu0 %vm608_vm8, %v589_v46 }
 0x116   : > { %v1709_v56 = vsel %vm504_vm6, 1.0, %v2130_v12  ;;  %v430_v61 = vpop.permute.xlu1 %429 }
 0x117   : > { %v590_v63 = vpack.c.bf16 %v1710_v21, %v1709_v56  ;;  %v296_v29 = vpop.permute.xlu0 %295  ;;  %vm476_vm0 = vcmp.lt.s32.totalorder %v2495_v26, %v430_v61 }
 0x118   : > { %vm346_vm12 = vcmp.ge.s32.totalorder %v2495_v26, %v296_v29 }
 0x119   : > { %vm506_vm13 = vmand %vm346_vm12, %vm474_vm11  ;;  %1821 = vmatprep.mubr.msk.bf16.mxu1 %vm608_vm8, %v590_v63  ;;  %1857 = vmatprep.mubr.msk.bf16.mxu0 %vm608_vm8, %v590_v63  ;;  %vm480_vm11 = vcmp.lt.s32.totalorder %v2495_v26, %v2533_v55 }
 0x11a   : > { %v1711_v11 = vsel %vm506_vm13, 1.0, %v2130_v12 }
 0x11b   : > { %v591_v48 = vpack.c.bf16 %v1712_v24, %v1711_v11  ;;  %v308_v58 = vpop.permute.xlu1 %307  ;;  %v302_v32 = vpop.permute.xlu0 %301 }
 0x11c   : > { %vm348_vm1 = vcmp.ge.s32.totalorder %v2495_v26, %v302_v32  ;;  %vm350_vm4 = vcmp.ge.s32.totalorder %v2495_v26, %v308_v58 }
 0x11d   : > { %vm508_vm2 = vmand %vm348_vm1, %vm476_vm0  ;;  %1822 = vmatmul.mubr.msk.bf16.gmra.mrb[20].mxu1 %vm608_vm8, %v591_v48  ;;  %1858 = vmatmul.mubr.msk.bf16.gmra.mrb[20].mxu0 %vm608_vm8, %v591_v48 }
 0x11e   : > { %v1713_v27 = vsel %vm508_vm2, 1.0, %v2130_v12 }
 0x11f   : > { %v592_v6 = vpack.c.bf16 %v1714_v13, %v1713_v27  ;;  %v311_v30 = vpop.permute.xlu0 %310 }
 0x120   : > { %v436_v47 = vpop.permute.xlu1 %435  ;;  %vm351_vm6 = vcmp.ge.s32.totalorder %v2495_v26, %v311_v30 }
 0x121   : > { %vm478_vm3 = vcmp.lt.s32.totalorder %v2495_v26, %v436_v47  ;;  %1825 = vmatprep.mubr.msk.bf16.mxu1 %vm608_vm8, %v592_v6  ;;  %1861 = vmatprep.mubr.msk.bf16.mxu0 %vm608_vm8, %v592_v6 }
 0x122   : > { %vm510_vm5 = vmand %vm350_vm4, %vm478_vm3 }
 0x123   : > { %v314_v60 = vpop.permute.xlu0 %313  ;;  %v1715_v34 = vsel %vm510_vm5, 1.0, %v2130_v12 }
 0x124   : > { %v439_v31 = vpop.permute.xlu1 %438  ;;  %vm352_vm10 = vcmp.ge.s32.totalorder %v2495_v26, %v314_v60 }
 0x125   : > { %vm479_vm7 = vcmp.lt.s32.totalorder %v2495_v26, %v439_v31  ;;  %vm512_vm12 = vmand %vm352_vm10, %vm480_vm11 }
 0x126   : > { %vm511_vm9 = vmand %vm351_vm6, %vm479_vm7  ;;  %v1717_v22 = vsel %vm512_vm12, 1.0, %v2130_v12 }
 0x127   : > { %v1716_v18 = vsel %vm511_vm9, 1.0, %v2130_v12  ;;  %v323_v62 = vpop.permute.xlu0 %322 }
 0x128   : > { %v593_v50 = vpack.c.bf16 %v1716_v18, %v1715_v34  ;;  %vm355_vm3 = vcmp.ge.s32.totalorder %v2495_v26, %v323_v62 }
 0x129   : > { %v317_v52 = vpop.permute.xlu1 %316 }
 0x12a   : > { %1826 = vmatmul.mubr.msk.bf16.gmra.mrb[24].mxu1 %vm608_vm8, %v593_v50  ;;  %1862 = vmatmul.mubr.msk.bf16.gmra.mrb[24].mxu0 %vm608_vm8, %v593_v50  ;;  %vm353_vm13 = vcmp.ge.s32.totalorder %v2495_v26, %v317_v52 }
 0x12b   : > { %v980_v14 = vpop.permute.xlu0 %979 }
 0x12c   : > { %v1043_v20 = vsub.s32 %v2239_v1, %v980_v14 }
 0x12e   : > { %v445_v2 = vpop.permute.xlu1 %444  ;;  %v1075_v53 = vcvt.s32.f32 %v1043_v20 }
 0x12f   : > { %vm481_vm14 = vcmp.lt.s32.totalorder %v2495_v26, %v445_v2  ;;  %v984_v49 = vpop.permute.xlu0 %983 }
 0x130   : > { %vm513_vm15 = vmand %vm353_vm13, %vm481_vm14  ;;  %v1107_v15 = vmax.f32 %v1075_v53, 1.0  ;;  %v1045_v1 = vsub.s32 %v2236_v0, %v984_v49  ;;  %vm1267_vm6 = vcmp.gt.f32.partialorder %v1075_v53, 0.0 }
 0x131   : > { %v1718_v17 = vsel %vm513_vm15, 1.0, %v2130_v12 }
 0x132   : > { %v594_v16 = vpack.c.bf16 %v1718_v17, %v1717_v22  ;;  %1961 = vrcp.f32 %v1107_v15  ;;  %v2674_v57 = vcvt.s32.f32 %v1045_v1 }
 0x133   : > { %v320_v54 = vpop.permute.xlu1 %319  ;;  %v988_v55 = vpop.permute.xlu0 %987 }
 0x134   : > { %1829 = vmatprep.mubr.msk.bf16.mxu1 %vm608_vm8, %v594_v16  ;;  %1865 = vmatprep.mubr.msk.bf16.mxu0 %vm608_vm8, %v594_v16  ;;  %v1047_v25 = vsub.s32 %v2319_v33, %v988_v55  ;;  %v1109_v46 = vmax.f32 %v2674_v57, 1.0  ;;  %vm354_vm1 = vcmp.ge.s32.totalorder %v2495_v26, %v320_v54 }
 0x136   : > { %v2680_v28 = vcvt.s32.f32 %v1047_v25  ;;  %1963 = vrcp.f32 %v1109_v46 }
 0x137   : > { %v992_v19 = vpop.permute.xlu0 %991 }
 0x138   : > { %v448_v59 = vpop.permute.xlu1 %447  ;;  %v1049_v23 = vsub.s32 %v2327_v35, %v992_v19  ;;  %v1111_v35 = vmax.f32 %v2680_v28, 1.0  ;;  %vm1271_vm7 = vcmp.gt.f32.partialorder %v2680_v28, 0.0 }
 0x139   : > { %vm482_vm0 = vcmp.lt.s32.totalorder %v2495_v26, %v448_v59 }
 0x13a   : > { %v2683_v0 = vcvt.s32.f32 %v1049_v23  ;;  %vm514_vm2 = vmand %vm354_vm1, %vm482_vm0  ;;  %1965 = vrcp.f32 %v1111_v35 }
 0x13b   : > { %v996_v21 = vpop.permute.xlu0 %995  ;;  %v1719_v24 = vsel %vm514_vm2, 1.0, %v2130_v12 }
 0x13c   : > { %v1962_v56 = vpop.eup %1961  ;;  %v451_v61 = vpop.permute.xlu1 %450  ;;  %v1051_v63 = vsub.s32 %v2333_v36, %v996_v21  ;;  %v1113_v48 = vmax.f32 %v2683_v0, 1.0  ;;  %vm1273_vm9 = vcmp.gt.f32.partialorder %v2683_v0, 0.0 }
 0x13d   : > { %v1171_v33 = vmul.f32 %v1962_v56, %v1107_v15  ;;  %vm483_vm4 = vcmp.lt.s32.totalorder %v2495_v26, %v451_v61 }
 0x13e   : > { %vm515_vm5 = vmand %vm355_vm3, %vm483_vm4  ;;  %v2695_v36 = vcvt.s32.f32 %v1051_v63  ;;  %1967 = vrcp.f32 %v1113_v48 }
 0x13f   : > { %v1203_v29 = vsub.f32 2.0, %v1171_v33  ;;  %v1720_v11 = vsel %vm515_vm5, 1.0, %v2130_v12  ;;  %v1000_v58 = vpop.permute.xlu0 %999 }
 0x140   : > { %v595_v32 = vpack.c.bf16 %v1720_v11, %v1719_v24  ;;  %v982_v13 = vpop.permute.xlu1 %981  ;;  %v1115_v34 = vmax.f32 %v2695_v36, 1.0  ;;  %v1964_v52 = vpop.eup %1963  ;;  %vm1275_vm13 = vcmp.gt.f32.partialorder %v2695_v36, 0.0 }
 0x141   : > { %v1044_v27 = vsub.s32 %v2249_v4, %v982_v13  ;;  %v1235_v26 = vmul.f32 %v1962_v56, %v1203_v29  ;;  %v1053_v4 = vsub.s32 %v2338_v37, %v1000_v58 }
 0x142   : > { %1830 = vmatmul.mubr.msk.bf16.gmra.mrb[28].mxu1 %vm608_vm8, %v595_v32  ;;  %1866 = vmatmul.mubr.msk.bf16.gmra.mrb[28].mxu0 %vm608_vm8, %v595_v32  ;;  %vm1269_vm8 = vcmp.gt.f32.partialorder %v2674_v57, 0.0 }
 0x143   : > { %v2697_v6 = vcvt.s32.f32 %v1044_v27  ;;  %v1299_v12 = vsel %vm1267_vm6, %v1235_v26, 0.0  ;;  %v1004_v30 = vpop.permute.xlu0 %1003  ;;  %v2708_v53 = vcvt.s32.f32 %v1053_v4 }
 0x144   : > { %v986_v47 = vpop.permute.xlu1 %985  ;;  %1333 = vperm.xlu0 %1960, %v1299_v12   ;;  %v1055_v18 = vsub.s32 %v2343_v38, %v1004_v30  ;;  %v1173_v38 = vmul.f32 %v1964_v52, %v1109_v46  ;;  %v1966_v22 = vpop.eup %1965 }
 0x145   : > { %v1108_v60 = vmax.f32 %v2697_v6, 1.0  ;;  %v1046_v31 = vsub.s32 %v2246_v3, %v986_v47  ;;  %vm1268_vm10 = vcmp.gt.f32.partialorder %v2697_v6, 0.0  ;;  %vm1277_vm15 = vcmp.gt.f32.partialorder %v2708_v53, 0.0 }
 0x146   : > { %v2712_v3 = vcvt.s32.f32 %v1055_v18  ;;  %v1205_v19 = vsub.f32 2.0, %v1173_v38 }
 0x147   : > { %1969 = vrcp.f32 %v1108_v60  ;;  %v2704_v62 = vcvt.s32.f32 %v1046_v31  ;;  %v1008_v50 = vpop.permute.xlu0 %1007 }
 0x148   : > { %v990_v14 = vpop.permute.xlu1 %989  ;;  %1971 = vrcp.f32 %v1115_v34  ;;  %v1057_v37 = vsub.s32 %v2348_v39, %v1008_v50  ;;  %v1968_v16 = vpop.eup %1967  ;;  %v1119_v55 = vmax.f32 %v2712_v3, 1.0  ;;  %v1175_v39 = vmul.f32 %v1966_v22, %v1111_v35 }
 0x149   : > { %v1110_v20 = vmax.f32 %v2704_v62, 1.0  ;;  %v1048_v2 = vsub.s32 %v2254_v5, %v990_v14  ;;  %v1117_v5 = vmax.f32 %v2708_v53, 1.0  ;;  %v1177_v46 = vmul.f32 %v1968_v16, %v1113_v48 }
 0x14a   : > { %v2721_v25 = vcvt.s32.f32 %v1057_v37  ;;  %v1207_v29 = vsub.f32 2.0, %v1175_v39  ;;  %v1237_v48 = vmul.f32 %v1964_v52, %v1205_v19  ;;  %vm1270_vm11 = vcmp.gt.f32.partialorder %v2704_v62, 0.0 }
 0x14b   : > { %1973 = vrcp.f32 %v1110_v20  ;;  %v2715_v49 = vcvt.s32.f32 %v1048_v2  ;;  %v1012_v15 = vpop.permute.xlu0 %1011  ;;  %vm1279_vm1 = vcmp.gt.f32.partialorder %v2712_v3, 0.0 }
 0x14c   : > { %v994_v17 = vpop.permute.xlu1 %993  ;;  %v1059_v33 = vsub.s32 %v2353_v40, %v1012_v15  ;;  %v1121_v35 = vmax.f32 %v2721_v25, 1.0  ;;  %v1209_v40 = vsub.f32 2.0, %v1177_v46  ;;  %v1301_v4 = vsel %vm1269_vm8, %v1237_v48, 0.0 }
 0x14d   : > { %v1112_v1 = vmax.f32 %v2715_v49, 1.0  ;;  %v1050_v54 = vsub.s32 %v2260_v7, %v994_v17  ;;  %v1239_v18 = vmul.f32 %v1966_v22, %v1207_v29  ;;  %vm1272_vm12 = vcmp.gt.f32.partialorder %v2715_v49, 0.0 }
 0x14e   : > { %v2744_v12 = vcvt.s32.f32 %v1059_v33  ;;  %v1241_v14 = vmul.f32 %v1968_v16, %v1209_v40  ;;  %vm1281_vm3 = vcmp.gt.f32.partialorder %v2721_v25, 0.0 }
 0x14f   : > { %1975 = vrcp.f32 %v1112_v1  ;;  %v2723_v59 = vcvt.s32.f32 %v1050_v54  ;;  %v1016_v23 = vpop.permute.xlu0 %1015 }
 0x150   : > { %v998_v21 = vpop.permute.xlu1 %997  ;;  %1977 = vrcp.f32 %v1117_v5  ;;  %v1061_v30 = vsub.s32 %v2358_v41, %v1016_v23  ;;  %v1123_v37 = vmax.f32 %v2744_v12, 1.0  ;;  %v1305_v23 = vsel %vm1273_vm9, %v1241_v14, 0.0 }
 0x151   : > { %v1970_v56 = vpop.eup %1969  ;;  %v1114_v61 = vmax.f32 %v2723_v59, 1.0  ;;  %v1052_v7 = vsub.s32 %v2265_v8, %v998_v21  ;;  %1979 = vrcp.f32 %v1119_v55  ;;  %vm1274_vm14 = vcmp.gt.f32.partialorder %v2723_v59, 0.0 }
 0x152   : > { %v1172_v63 = vmul.f32 %v1970_v56, %v1108_v60  ;;  %v2738_v58 = vpop.eup %1971  ;;  %v2764_v57 = vcvt.s32.f32 %v1061_v30  ;;  %vm1283_vm6 = vcmp.gt.f32.partialorder %v2744_v12, 0.0 }
 0x153   : > { %1981 = vrcp.f32 %v1114_v61  ;;  %v2736_v24 = vcvt.s32.f32 %v1052_v7  ;;  %v1020_v11 = vpop.permute.xlu0 %1019  ;;  %v1179_v41 = vmul.f32 %v2738_v58, %v1115_v34 }
 0x154   : > { %v1204_v8 = vsub.f32 2.0, %v1172_v63  ;;  %v1002_v32 = vpop.permute.xlu1 %1001  ;;  %1983 = vrcp.f32 %v1121_v35  ;;  %v1063_v22 = vsub.s32 %v2363_v42, %v1020_v11  ;;  %v1125_v28 = vmax.f32 %v2764_v57, 1.0 }
 0x155   : > { %v1974_v13 = vpop.eup %1973  ;;  %v1116_v27 = vmax.f32 %v2736_v24, 1.0  ;;  %v1054_v26 = vsub.s32 %v2270_v9, %v1002_v32  ;;  %v1211_v42 = vsub.f32 2.0, %v1179_v41  ;;  %vm1276_vm0 = vcmp.gt.f32.partialorder %v2736_v24, 0.0  ;;  %v2029_v24 = vld [vmem:[%s2225_s17 + $0xe0] sm:$0xff] }
 0x156   : > { %v1174_v47 = vmul.f32 %v1974_v13, %v1110_v20  ;;  %v1236_v60 = vmul.f32 %v1970_v56, %v1204_v8  ;;  %v2025_v56 = vld [vmem:[%s2225_s17 + $0x78] sm:$0xff]  ;;  %v2789_v63 = vcvt.s32.f32 %v1063_v22 }
 0x157   : > { %1985 = vrcp.f32 %v1116_v27  ;;  %v2752_v31 = vcvt.s32.f32 %v1054_v26  ;;  %v2756_v9 = vpop.permute.xlu0 %1023 }
 0x158   : > { %v1206_v50 = vsub.f32 2.0, %v1174_v47  ;;  %v1006_v6 = vpop.permute.xlu1 %1005  ;;  %v1300_v52 = vsel %vm1268_vm10, %v1236_v60, 0.0  ;;  %v1065_v0 = vsub.s32 %v2368_v43, %v2756_v9  ;;  %v2026_v47 = vld [vmem:[%s2225_s17 + $0x88] sm:$0xff]  ;;  %vm1287_vm10 = vcmp.gt.f32.partialorder %v2789_v63, 0.0 }
 0x159   : > { %v1976_v20 = vpop.eup %1975  ;;  %v1118_v2 = vmax.f32 %v2752_v31, 1.0  ;;  %v1056_v38 = vsub.s32 %v2275_v10, %v1006_v6  ;;  %1338 = vperm.xlu1 %1959, %v1300_v52   ;;  %v1303_v10 = vsel %vm1271_vm7, %v1239_v18, 0.0  ;;  %vm1278_vm2 = vcmp.gt.f32.partialorder %v2752_v31, 0.0 }
 0x15a   : > { %v1176_v15 = vmul.f32 %v1976_v20, %v1112_v1  ;;  %v1238_v17 = vmul.f32 %v1974_v13, %v1206_v50  ;;  %v2768_v34 = vpop.eup %1977  ;;  %v1243_v13 = vmul.f32 %v2738_v58, %v1211_v42  ;;  %v1127_v58 = vmax.f32 %v2789_v63, 1.0 }
 0x15b   : > { %1987 = vrcp.f32 %v1118_v2  ;;  %v2772_v16 = vcvt.s32.f32 %v1056_v38  ;;  %v1028_v54 = vpop.permute.xlu0 %1027  ;;  %v2777_v1 = vpop.eup %1979  ;;  %v1181_v11 = vmul.f32 %v2768_v34, %v1117_v5  ;;  %v2027_v38 = vld [vmem:[%s2225_s17 + $0x98] sm:$0xff]  ;;  %vm1285_vm7 = vcmp.gt.f32.partialorder %v2764_v57, 0.0 }
 0x15c   : > { %v1208_v62 = vsub.f32 2.0, %v1176_v15  ;;  %v1010_v19 = vpop.permute.xlu1 %1009  ;;  %v1302_v39 = vsel %vm1270_vm11, %v1238_v17, 0.0  ;;  %1989 = vrcp.f32 %v1123_v37  ;;  %v2806_v43 = vmul.f32 %v2777_v1, %v1119_v55 }
 0x15d   : > { %v1982_v46 = vpop.eup %1981  ;;  %v1120_v21 = vmax.f32 %v2772_v16, 1.0  ;;  %v1058_v7 = vsub.s32 %v2025_v56, %v1010_v19  ;;  %1348 = vperm.xlu0 %1960, %v1302_v39   ;;  %1343 = vperm.xlu1 %1959, %v1301_v4   ;;  %v1067_v55 = vsub.s32 %v2373_v44, %v1028_v54  ;;  %v2820_v4 = vcvt.s32.f32 %v1065_v0  ;;  %v2028_v0 = vld [vmem:[%s2225_s17 + $0xa8] sm:$0xff] }
 0x15e   : > { %v1178_v33 = vmul.f32 %v1982_v46, %v1114_v61  ;;  %v1240_v29 = vmul.f32 %v1976_v20, %v1208_v62  ;;  %v2801_v61 = vpop.eup %1983  ;;  %v1213_v18 = vsub.f32 2.0, %v1181_v11  ;;  %v1215_v41 = vsub.f32 2.0, %v2806_v43 }
 0x15f   : > { %1991 = vrcp.f32 %v1120_v21  ;;  %v2799_v48 = vcvt.s32.f32 %v1058_v7  ;;  %v1032_v8 = vpop.permute.xlu0 %1031  ;;  %v2838_v22 = vcvt.s32.f32 %v1067_v55  ;;  %v1129_v59 = vmax.f32 %v2820_v4, 1.0 }
 0x160   : > { %v1210_v40 = vsub.f32 2.0, %v1178_v33  ;;  %v1014_v32 = vpop.permute.xlu1 %1013  ;;  %v1304_v5 = vsel %vm1272_vm12, %v1240_v29, 0.0  ;;  %1993 = vrcp.f32 %v1125_v28  ;;  %v1069_v17 = vsub.s32 %v2378_v45, %v1032_v8 }
 0x161   : > { %v1986_v26 = vpop.eup %1985  ;;  %v1122_v30 = vmax.f32 %v2799_v48, 1.0  ;;  %v1060_v60 = vsub.s32 %v2026_v47, %v1014_v32  ;;  %1358 = vperm.xlu0 %1960, %v1304_v5   ;;  %1353 = vperm.xlu1 %1959, %v1303_v10   ;;  %v1307_v45 = vsel %vm1275_vm13, %v1243_v13, 0.0  ;;  %v1131_v33 = vmax.f32 %v2838_v22, 1.0 }
 0x162   : > { %v1180_v49 = vmul.f32 %v1986_v26, %v1116_v27  ;;  %v1242_v9 = vmul.f32 %v1982_v46, %v1210_v40  ;;  %v2831_v27 = vmul.f32 %v2801_v61, %v1121_v35  ;;  %v1245_v46 = vmul.f32 %v2768_v34, %v1213_v18 }
 0x163   : > { %1995 = vrcp.f32 %v1122_v30  ;;  %v2825_v50 = vcvt.s32.f32 %v1060_v60  ;;  %v1036_v10 = vpop.permute.xlu0 %1035  ;;  %v2863_v29 = vcvt.s32.f32 %v1069_v17  ;;  %vm1280_vm4 = vcmp.gt.f32.partialorder %v2772_v16, 0.0 }
 0x164   : > { %v1212_v44 = vsub.f32 2.0, %v1180_v49  ;;  %v1018_v6 = vpop.permute.xlu1 %1017  ;;  %v1306_v52 = vsel %vm1274_vm14, %v1242_v9, 0.0  ;;  %1997 = vrcp.f32 %v1127_v58  ;;  %v1071_v34 = vsub.s32 %v2029_v24, %v1036_v10  ;;  %v2030_v9 = vld [vmem:[%s2225_s17 + $0xb8] sm:$0xff]  ;;  %v2031_v10 = vld [vmem:[%s2225_s17 + $0xc8] sm:$0xff] }
 0x165   : > { %v1988_v14 = vpop.eup %1987  ;;  %v1124_v20 = vmax.f32 %v2825_v50, 1.0  ;;  %v1062_v15 = vsub.s32 %v2027_v38, %v1018_v6  ;;  %1368 = vperm.xlu0 %1960, %v1306_v52   ;;  %1363 = vperm.xlu1 %1959, %v1305_v23   ;;  %v1309_v47 = vsel %vm1277_vm15, %v1245_v46, 0.0  ;;  %v1247_v60 = vmul.f32 %v2777_v1, %v1215_v41 }
 0x166   : > { %v1182_v35 = vmul.f32 %v1988_v14, %v1118_v2  ;;  %v1244_v54 = vmul.f32 %v1986_v26, %v1212_v44  ;;  %v2846_v42 = vpop.eup %1989  ;;  %v1217_v2 = vsub.f32 2.0, %v2831_v27  ;;  %v1133_v49 = vmax.f32 %v2863_v29, 1.0 }
 0x167   : > { %1999 = vrcp.f32 %v1124_v20  ;;  %v2851_v62 = vcvt.s32.f32 %v1062_v15  ;;  %v1187_v43 = vmul.f32 %v2846_v42, %v1123_v37  ;;  %v2892_v44 = vcvt.s32.f32 %v1071_v34 }
 0x168   : > { %v1214_v19 = vsub.f32 2.0, %v1182_v35  ;;  %v1022_v39 = vpop.permute.xlu1 %1021  ;;  %v1308_v23 = vsel %vm1276_vm0, %v1244_v54, 0.0  ;;  %2001 = vrcp.f32 %v1129_v59  ;;  %v1249_v15 = vmul.f32 %v2801_v61, %v1217_v2 }
 0x169   : > { %v1992_v56 = vpop.eup %1991  ;;  %v1126_v7 = vmax.f32 %v2851_v62, 1.0  ;;  %v1064_v36 = vsub.s32 %v2028_v0, %v1022_v39  ;;  %1378 = vperm.xlu0 %1960, %v1308_v23   ;;  %1373 = vperm.xlu1 %1959, %v1307_v45   ;;  %v1219_v41 = vsub.f32 2.0, %v1187_v43  ;;  %vm1282_vm5 = vcmp.gt.f32.partialorder %v2799_v48, 0.0 }
 0x16a   : > { %v1184_v11 = vmul.f32 %v1992_v56, %v1120_v21  ;;  %v1246_v8 = vmul.f32 %v1988_v14, %v1214_v19  ;;  %v2870_v40 = vpop.eup %1993  ;;  %v1040_v21 = vpop.permute.xlu0 %1039  ;;  %v1135_v3 = vmax.f32 %v2892_v44, 1.0  ;;  %vm1284_vm8 = vcmp.gt.f32.partialorder %v2825_v50, 0.0 }
 0x16b   : > { %2003 = vrcp.f32 %v1126_v7  ;;  %v2878_v32 = vcvt.s32.f32 %v1064_v36  ;;  %v1073_v53 = vsub.s32 %v2410_v51, %v1040_v21  ;;  %v1189_v27 = vmul.f32 %v2870_v40, %v1125_v28 }
 0x16c   : > { %v1216_v5 = vsub.f32 2.0, %v1184_v11  ;;  %v1026_v13 = vpop.permute.xlu1 %1025  ;;  %v1310_v26 = vsel %vm1278_vm2, %v1246_v8, 0.0  ;;  %2005 = vrcp.f32 %v1131_v33  ;;  %v1311_v51 = vsel %vm1279_vm1, %v1247_v60, 0.0  ;;  %v2032_v11 = vld [vmem:[%s2225_s17 + $0xd8] sm:$0xff] }
 0x16d   : > { %v1996_v55 = vpop.eup %1995  ;;  %v1128_v37 = vmax.f32 %v2878_v32, 1.0  ;;  %v1066_v18 = vsub.s32 %v2030_v9, %v1026_v13  ;;  %1388 = vperm.xlu0 %1960, %v1310_v26   ;;  %1383 = vperm.xlu1 %1959, %v1309_v47   ;;  %v2917_v54 = vcvt.s32.f32 %v1073_v53  ;;  %v1221_v45 = vsub.f32 2.0, %v1189_v27 }
 0x16e   : > { %v1186_v31 = vmul.f32 %v1996_v55, %v1122_v30  ;;  %v1248_v1 = vmul.f32 %v1992_v56, %v1216_v5  ;;  %v2902_v52 = vpop.eup %1997  ;;  %v1313_v56 = vsel %vm1281_vm3, %v1249_v15, 0.0  ;;  %v1251_v0 = vmul.f32 %v2846_v42, %v1219_v41 }
 0x16f   : > { %2007 = vrcp.f32 %v1128_v37  ;;  %v2900_v6 = vcvt.s32.f32 %v1066_v18  ;;  %v1191_v2 = vmul.f32 %v2902_v52, %v1127_v58  ;;  %v1137_v25 = vmax.f32 %v2917_v54, 1.0 }
 0x170   : > { %v1218_v14 = vsub.f32 2.0, %v1186_v31  ;;  %v1030_v30 = vpop.permute.xlu1 %1029  ;;  %v1312_v38 = vsel %vm1280_vm4, %v1248_v1, 0.0  ;;  %2009 = vrcp.f32 %v1133_v49  ;;  %v1315_v26 = vsel %vm1283_vm6, %v1251_v0, 0.0 }
 0x171   : > { %v2000_v17 = vpop.eup %1999  ;;  %v1130_v28 = vmax.f32 %v2900_v6, 1.0  ;;  %v1068_v35 = vsub.s32 %v2031_v10, %v1030_v30  ;;  %1398 = vperm.xlu0 %1960, %v1312_v38   ;;  %1393 = vperm.xlu1 %1959, %v1311_v51   ;;  %v1223_v8 = vsub.f32 2.0, %v1191_v2  ;;  %v1253_v47 = vmul.f32 %v2870_v40, %v1221_v45  ;;  %v2034_v38 = vld [vmem:[%s2225_s17 + $0xf8] sm:$0xff] }
 0x172   : > { %v1188_v16 = vmul.f32 %v2000_v17, %v1124_v20  ;;  %v1250_v61 = vmul.f32 %v1996_v55, %v1218_v14  ;;  %v2926_v39 = vpop.eup %2001  ;;  %v2033_v55 = vld [vmem:[%s2225_s17 + $0xe8] sm:$0xff]  ;;  %vm1286_vm9 = vcmp.gt.f32.partialorder %v2851_v62, 0.0  ;;  %vm1288_vm11 = vcmp.gt.f32.partialorder %v2878_v32, 0.0 }
 0x173   : > { %2011 = vrcp.f32 %v1130_v28  ;;  %v2924_v19 = vcvt.s32.f32 %v1068_v35  ;;  %v1193_v43 = vmul.f32 %v2926_v39, %v1129_v59  ;;  %v1255_v27 = vmul.f32 %v2902_v52, %v1223_v8 }
 0x174   : > { %v1220_v23 = vsub.f32 2.0, %v1188_v16  ;;  %v1034_v20 = vpop.permute.xlu1 %1033  ;;  %v1314_v46 = vsel %vm1282_vm5, %v1250_v61, 0.0  ;;  %2013 = vrcp.f32 %v1135_v3  ;;  %vm1289_vm12 = vcmp.gt.f32.partialorder %v2820_v4, 0.0 }
 0x175   : > { %v2004_v36 = vpop.eup %2003  ;;  %v1132_v58 = vmax.f32 %v2924_v19, 1.0  ;;  %v1070_v24 = vsub.s32 %v2032_v11, %v1034_v20  ;;  %1408 = vperm.xlu0 %1960, %v1314_v46   ;;  %1403 = vperm.xlu1 %1959, %v1313_v56   ;;  %v1225_v18 = vsub.f32 2.0, %v1193_v43  ;;  %v1319_v61 = vsel %vm1287_vm10, %v1255_v27, 0.0 }
 0x176   : > { %v1190_v48 = vmul.f32 %v2004_v36, %v1126_v7  ;;  %v1252_v42 = vmul.f32 %v2000_v17, %v1220_v23  ;;  %v2942_v34 = vpop.eup %2005  ;;  %vm1290_vm13 = vcmp.gt.f32.partialorder %v2900_v6, 0.0  ;;  %vm1291_vm14 = vcmp.gt.f32.partialorder %v2838_v22, 0.0 }
 0x177   : > { %2015 = vrcp.f32 %v1132_v58  ;;  %v2949_v21 = vcvt.s32.f32 %v1070_v24  ;;  %v1195_v31 = vmul.f32 %v2942_v34, %v1131_v33  ;;  %v1257_v45 = vmul.f32 %v2926_v39, %v1225_v18 }
 0x178   : > { %v1222_v7 = vsub.f32 2.0, %v1190_v48  ;;  %v1038_v5 = vpop.permute.xlu1 %1037  ;;  %v1316_v13 = vsel %vm1284_vm8, %v1252_v42, 0.0  ;;  %2017 = vrcp.f32 %v1137_v25  ;;  %vm1293_vm15 = vcmp.gt.f32.partialorder %v2863_v29, 0.0 }
 0x179   : > { %v2008_v60 = vpop.eup %2007  ;;  %v1134_v59 = vmax.f32 %v2949_v21, 1.0  ;;  %v1072_v9 = vsub.s32 %v2033_v55, %v1038_v5  ;;  %1418 = vperm.xlu0 %1960, %v1316_v13   ;;  %1413 = vperm.xlu1 %1959, %v1315_v26   ;;  %v1227_v17 = vsub.f32 2.0, %v1195_v31  ;;  %v1321_v56 = vsel %vm1289_vm12, %v1257_v45, 0.0 }
 0x17a   : > { %v1192_v50 = vmul.f32 %v2008_v60, %v1128_v37  ;;  %v1254_v12 = vmul.f32 %v2004_v36, %v1222_v7  ;;  %v2010_v40 = vpop.eup %2009  ;;  %v1317_v37 = vsel %vm1285_vm7, %v1253_v47, 0.0  ;;  %vm1292_vm0 = vcmp.gt.f32.partialorder %v2924_v19, 0.0 }
 0x17b   : > { %2019 = vrcp.f32 %v1134_v59  ;;  %v2967_v53 = vcvt.s32.f32 %v1072_v9  ;;  %v1197_v57 = vmul.f32 %v2010_v40, %v1133_v49  ;;  %v1259_v4 = vmul.f32 %v2942_v34, %v1227_v17 }
 0x17c   : > { %v1224_v1 = vsub.f32 2.0, %v1192_v50  ;;  %v1042_v41 = vpop.permute.xlu1 %1041  ;;  %v1318_v62 = vsel %vm1286_vm9, %v1254_v12, 0.0  ;;  %vm1294_vm1 = vcmp.gt.f32.partialorder %v2949_v21, 0.0  ;;  %vm1295_vm2 = vcmp.gt.f32.partialorder %v2892_v44, 0.0 }
 0x17d   : > { %v2012_v14 = vpop.eup %2011  ;;  %v1136_v30 = vmax.f32 %v2967_v53, 1.0  ;;  %v1074_v51 = vsub.s32 %v2034_v38, %v1042_v41  ;;  %1428 = vperm.xlu0 %1960, %v1318_v62   ;;  %1423 = vperm.xlu1 %1959, %v1317_v37   ;;  %v1229_v23 = vsub.f32 2.0, %v1197_v57  ;;  %v1323_v42 = vsel %vm1291_vm14, %v1259_v4, 0.0 }
 0x17e   : > { %v1194_v33 = vmul.f32 %v2012_v14, %v1130_v28  ;;  %v1256_v15 = vmul.f32 %v2008_v60, %v1224_v1  ;;  %v2014_v10 = vpop.eup %2013  ;;  %vm1296_vm3 = vcmp.gt.f32.partialorder %v2967_v53, 0.0  ;;  %vm1297_vm4 = vcmp.gt.f32.partialorder %v2917_v54, 0.0 }
 0x17f   : > { %2021 = vrcp.f32 %v1136_v30  ;;  %v2980_v52 = vcvt.s32.f32 %v1074_v51  ;;  %v1199_v63 = vmul.f32 %v2014_v10, %v1135_v3  ;;  %v1261_v3 = vmul.f32 %v2010_v40, %v1229_v23 }
 0x180   : > { %v1226_v35 = vsub.f32 2.0, %v1194_v33  ;;  %v1320_v16 = vsel %vm1288_vm11, %v1256_v15, 0.0 }
 0x181   : > { %v2016_v32 = vpop.eup %2015  ;;  %v1138_v28 = vmax.f32 %v2980_v52, 1.0  ;;  %1438 = vperm.xlu0 %1960, %v1320_v16   ;;  %1433 = vperm.xlu1 %1959, %v1319_v61   ;;  %v1231_v6 = vsub.f32 2.0, %v1199_v63  ;;  %v1325_v43 = vsel %vm1293_vm15, %v1261_v3, 0.0  ;;  %vm1298_vm5 = vcmp.gt.f32.partialorder %v2980_v52, 0.0 }
 0x182   : > { %v1196_v49 = vmul.f32 %v2016_v32, %v1132_v58  ;;  %v1258_v2 = vmul.f32 %v2012_v14, %v1226_v35  ;;  %v2018_v20 = vpop.eup %2017 }
 0x183   : > { %2023 = vrcp.f32 %v1138_v28  ;;  %v1201_v11 = vmul.f32 %v2018_v20, %v1137_v25  ;;  %v1263_v13 = vmul.f32 %v2014_v10, %v1231_v6 }
 0x184   : > { %v1228_v39 = vsub.f32 2.0, %v1196_v49  ;;  %v1322_v46 = vsel %vm1290_vm13, %v1258_v2, 0.0 }
 0x185   : > { %v2020_v0 = vpop.eup %2019  ;;  %1448 = vperm.xlu0 %1960, %v1322_v46   ;;  %1443 = vperm.xlu1 %1959, %v1321_v56   ;;  %v1233_v7 = vsub.f32 2.0, %v1201_v11 }
 0x186   : > { %v1198_v36 = vmul.f32 %v2020_v0, %v1134_v59  ;;  %v1260_v58 = vmul.f32 %v2016_v32, %v1228_v39  ;;  %v1327_v59 = vsel %vm1295_vm2, %v1263_v13, 0.0 }
 0x187   : > { %v1265_v55 = vmul.f32 %v2018_v20, %v1233_v7 }
 0x188   : > { %v1230_v24 = vsub.f32 2.0, %v1198_v36  ;;  %v1324_v48 = vsel %vm1292_vm0, %v1260_v58, 0.0 }
 0x189   : > { %v2022_v34 = vpop.eup %2021  ;;  %1458 = vperm.xlu0 %1960, %v1324_v48   ;;  %1453 = vperm.xlu1 %1959, %v1323_v42   ;;  %v1329_v50 = vsel %vm1297_vm4, %v1265_v55, 0.0 }
 0x18a   : > { %v1200_v22 = vmul.f32 %v2022_v34, %v1136_v30  ;;  %v1262_v8 = vmul.f32 %v2020_v0, %v1230_v24 }
 0x18c   : > { %v1232_v29 = vsub.f32 2.0, %v1200_v22  ;;  %v1326_v5 = vsel %vm1294_vm1, %v1262_v8, 0.0 }
 0x18d   : > { %v2024_v19 = vpop.eup %2023  ;;  %1468 = vperm.xlu0 %1960, %v1326_v5   ;;  %1463 = vperm.xlu1 %1959, %v1325_v43  }
 0x18e   : > { %v1202_v25 = vmul.f32 %v2024_v19, %v1138_v28  ;;  %v1264_v26 = vmul.f32 %v2022_v34, %v1232_v29 }
 0x190   : > { %v1234_v47 = vsub.f32 2.0, %v1202_v25  ;;  %v1328_v60 = vsel %vm1296_vm3, %v1264_v26, 0.0 }
 0x191   : > { %1478 = vperm.xlu0 %1960, %v1328_v60   ;;  %1473 = vperm.xlu1 %1959, %v1327_v59  }
 0x192   : > { %v1266_v21 = vmul.f32 %v2024_v19, %v1234_v47 }
 0x194   : > { %v1330_v9 = vsel %vm1298_vm5, %v1266_v21, 0.0 }
 0x195   : > { %1488 = vperm.xlu0 %1960, %v1330_v9   ;;  %1483 = vperm.xlu1 %1959, %v1329_v50  }
 0x1c3   : > { %v1803_v44 = vpop.f32.mrb[0].mxu1  ;;  %v1839_v12 = vpop.f32.mrb[0].mxu0 }
 0x1c4   : > { %v861_v40 = vadd.f32 %v1839_v12, %v1803_v44  ;;  %v691_v18 = vpop.f32.mrb[1].mxu1  ;;  %v852_v31 = vpop.f32.mrb[1].mxu0 }
 0x1c5   : > { %v853_v53 = vadd.f32 %v852_v31, %v691_v18  ;;  %v1804_v1 = vpop.f32.mrb[2].mxu1  ;;  %v1840_v41 = vpop.f32.mrb[2].mxu0 }
 0x1c6   : > { %v864_v62 = vadd.f32 %v1840_v41, %v1804_v1  ;;  %v694_v54 = vpop.f32.mrb[3].mxu1  ;;  %v855_v37 = vpop.f32.mrb[3].mxu0 }
 0x1c7   : > { %v856_v27 = vadd.f32 %v855_v37, %v694_v54  ;;  %v1334_v14 = vpop.permute.xlu0 %1333 }
 0x1c8   : > { %v1491_v30 = vmul.f32 %v1334_v14, %v853_v53 }
 0x1ca   : > { %1523 = vst [vmem:[%s2232_s22] sm:$0xff] %v1491_v30 }
 0x1d0   : > { %v1807_v38 = vpop.f32.mrb[4].mxu1  ;;  %v1843_v51 = vpop.f32.mrb[4].mxu0 }
 0x1d1   : > { %v877_v33 = vadd.f32 %v1843_v51, %v1807_v38  ;;  %v707_v15 = vpop.f32.mrb[5].mxu1  ;;  %v868_v17 = vpop.f32.mrb[5].mxu0 }
 0x1d2   : > { %v869_v57 = vadd.f32 %v868_v17, %v707_v15  ;;  %v1808_v52 = vpop.f32.mrb[6].mxu1  ;;  %v1844_v10 = vpop.f32.mrb[6].mxu0 }
 0x1d3   : > { %v880_v35 = vadd.f32 %v1844_v10, %v1808_v52  ;;  %v710_v16 = vpop.f32.mrb[7].mxu1  ;;  %v871_v61 = vpop.f32.mrb[7].mxu0 }
 0x1d4   : > { %v872_v45 = vadd.f32 %v871_v61, %v710_v16 }
 0x1d8   : > { %v1339_v32 = vpop.permute.xlu1 %1338  ;;  %v1811_v28 = vpop.f32.mrb[8].mxu1 }
 0x1d9   : > { %v1492_v49 = vmul.f32 %v1339_v32, %v856_v27  ;;  %v1847_v2 = vpop.f32.mrb[8].mxu0  ;;  %v723_v23 = vpop.f32.mrb[9].mxu1 }
 0x1da   : > { %v893_v63 = vadd.f32 %v1847_v2, %v1811_v28  ;;  %v884_v20 = vpop.f32.mrb[9].mxu0  ;;  %v1812_v39 = vpop.f32.mrb[10].mxu1 }
 0x1db   : > { %1524 = vst [vmem:[%s2232_s22 + $0x8] sm:$0xff] %v1492_v49  ;;  %v885_v46 = vadd.f32 %v884_v20, %v723_v23  ;;  %v1848_v56 = vpop.f32.mrb[10].mxu0  ;;  %v726_v4 = vpop.f32.mrb[11].mxu1 }
 0x1dc   : > { %v896_v0 = vadd.f32 %v1848_v56, %v1812_v39  ;;  %v887_v36 = vpop.f32.mrb[11].mxu0  ;;  %v1344_v58 = vpop.permute.xlu1 %1343 }
 0x1dd   : > { %v888_v6 = vadd.f32 %v887_v36, %v726_v4  ;;  %v1493_v3 = vmul.f32 %v1344_v58, %v861_v40  ;;  %v1349_v11 = vpop.permute.xlu0 %1348 }
 0x1de   : > { %v1494_v24 = vmul.f32 %v1349_v11, %v864_v62 }
 0x1df   : > { %1525 = vst [vmem:[%s2232_s22 + $0x10] sm:$0xff] %v1493_v3 }
 0x1e0   : > { %1526 = vst [vmem:[%s2232_s22 + $0x18] sm:$0xff] %v1494_v24  ;;  %v1815_v48 = vpop.f32.mrb[12].mxu1  ;;  %v1851_v42 = vpop.f32.mrb[12].mxu0 }
 0x1e1   : > { %v3007_v34 = vadd.f32 %v1851_v42, %v1815_v48  ;;  %v1354_v22 = vpop.permute.xlu1 %1353  ;;  %v1359_v8 = vpop.permute.xlu0 %1358 }
 0x1e2   : > { %v1495_v43 = vmul.f32 %v1354_v22, %v869_v57  ;;  %v1496_v7 = vmul.f32 %v1359_v8, %v872_v45  ;;  %v739_v29 = vpop.f32.mrb[13].mxu1  ;;  %v900_v5 = vpop.f32.mrb[13].mxu0 }
 0x1e3   : > { %v901_v13 = vadd.f32 %v900_v5, %v739_v29  ;;  %v1816_v19 = vpop.f32.mrb[14].mxu1  ;;  %v1852_v25 = vpop.f32.mrb[14].mxu0 }
 0x1e4   : > { %1527 = vst [vmem:[%s2232_s22 + $0x20] sm:$0xff] %v1495_v43  ;;  %1528 = vst [vmem:[%s2232_s22 + $0x28] sm:$0xff] %v1496_v7  ;;  %v912_v26 = vadd.f32 %v1852_v25, %v1816_v19  ;;  %v742_v47 = vpop.f32.mrb[15].mxu1  ;;  %v903_v60 = vpop.f32.mrb[15].mxu0 }
 0x1e5   : > { %v904_v59 = vadd.f32 %v903_v60, %v742_v47  ;;  %v1364_v55 = vpop.permute.xlu1 %1363  ;;  %v1369_v21 = vpop.permute.xlu0 %1368 }
 0x1e6   : > { %v1497_v9 = vmul.f32 %v1364_v55, %v877_v33  ;;  %v1498_v50 = vmul.f32 %v1369_v21, %v880_v35 }
 0x1e8   : > { %1529 = vst [vmem:[%s2232_s22 + $0x30] sm:$0xff] %v1497_v9  ;;  %1530 = vst [vmem:[%s2232_s22 + $0x38] sm:$0xff] %v1498_v50  ;;  %v1819_v44 = vpop.f32.mrb[16].mxu1  ;;  %v1855_v12 = vpop.f32.mrb[16].mxu0 }
 0x1e9   : > { %v925_v40 = vadd.f32 %v1855_v12, %v1819_v44  ;;  %v1374_v18 = vpop.permute.xlu1 %1373  ;;  %v1379_v31 = vpop.permute.xlu0 %1378 }
 0x1ea   : > { %v1499_v53 = vmul.f32 %v1374_v18, %v885_v46  ;;  %v1500_v1 = vmul.f32 %v1379_v31, %v888_v6  ;;  %v755_v41 = vpop.f32.mrb[17].mxu1  ;;  %v916_v62 = vpop.f32.mrb[17].mxu0 }
 0x1eb   : > { %v917_v54 = vadd.f32 %v916_v62, %v755_v41  ;;  %v1820_v37 = vpop.f32.mrb[18].mxu1  ;;  %v1856_v27 = vpop.f32.mrb[18].mxu0 }
 0x1ec   : > { %1531 = vst [vmem:[%s2232_s22 + $0x40] sm:$0xff] %v1499_v53  ;;  %1532 = vst [vmem:[%s2232_s22 + $0x48] sm:$0xff] %v1500_v1  ;;  %v928_v14 = vadd.f32 %v1856_v27, %v1820_v37  ;;  %v758_v30 = vpop.f32.mrb[19].mxu1  ;;  %v919_v38 = vpop.f32.mrb[19].mxu0 }
 0x1ed   : > { %v920_v51 = vadd.f32 %v919_v38, %v758_v30  ;;  %v1384_v33 = vpop.permute.xlu1 %1383  ;;  %v1389_v15 = vpop.permute.xlu0 %1388 }
 0x1ee   : > { %v1501_v17 = vmul.f32 %v1384_v33, %v893_v63  ;;  %v1502_v57 = vmul.f32 %v1389_v15, %v896_v0 }
 0x1f0   : > { %1533 = vst [vmem:[%s2232_s22 + $0x50] sm:$0xff] %v1501_v17  ;;  %1534 = vst [vmem:[%s2232_s22 + $0x58] sm:$0xff] %v1502_v57  ;;  %v1823_v52 = vpop.f32.mrb[20].mxu1  ;;  %v1859_v10 = vpop.f32.mrb[20].mxu0 }
 0x1f1   : > { %v941_v35 = vadd.f32 %v1859_v10, %v1823_v52  ;;  %v1394_v16 = vpop.permute.xlu1 %1393  ;;  %v1399_v61 = vpop.permute.xlu0 %1398 }
 0x1f2   : > { %v1503_v45 = vmul.f32 %v1394_v16, %v901_v13  ;;  %v1504_v32 = vmul.f32 %v1399_v61, %v904_v59  ;;  %v771_v28 = vpop.f32.mrb[21].mxu1  ;;  %v932_v49 = vpop.f32.mrb[21].mxu0 }
 0x1f3   : > { %v933_v2 = vadd.f32 %v932_v49, %v771_v28  ;;  %v1824_v23 = vpop.f32.mrb[22].mxu1  ;;  %v1860_v20 = vpop.f32.mrb[22].mxu0 }
 0x1f4   : > { %1535 = vst [vmem:[%s2232_s22 + $0x60] sm:$0xff] %v1503_v45  ;;  %1536 = vst [vmem:[%s2232_s22 + $0x68] sm:$0xff] %v1504_v32  ;;  %v944_v63 = vadd.f32 %v1860_v20, %v1824_v23  ;;  %v774_v39 = vpop.f32.mrb[23].mxu1  ;;  %v935_v46 = vpop.f32.mrb[23].mxu0 }
 0x1f5   : > { %v936_v56 = vadd.f32 %v935_v46, %v774_v39  ;;  %v1404_v4 = vpop.permute.xlu1 %1403  ;;  %v1409_v0 = vpop.permute.xlu0 %1408 }
 0x1f6   : > { %v1505_v36 = vmul.f32 %v1404_v4, %v3007_v34  ;;  %v1506_v58 = vmul.f32 %v1409_v0, %v912_v26 }
 0x1f8   : > { %1537 = vst [vmem:[%s2232_s22 + $0x70] sm:$0xff] %v1505_v36  ;;  %1538 = vst [vmem:[%s2232_s22 + $0x78] sm:$0xff] %v1506_v58 }
 0x1f9   : > { %v1414_v6 = vpop.permute.xlu1 %1413  ;;  %v1419_v3 = vpop.permute.xlu0 %1418 }
 0x1fa   : > { %v1507_v11 = vmul.f32 %v1414_v6, %v917_v54  ;;  %v1508_v24 = vmul.f32 %v1419_v3, %v920_v51 }
 0x1fc   : > { %1539 = vst [vmem:[%s2232_s22 + $0x80] sm:$0xff] %v1507_v11  ;;  %1540 = vst [vmem:[%s2232_s22 + $0x88] sm:$0xff] %v1508_v24 }
 0x1fd   : > { %v1424_v48 = vpop.permute.xlu1 %1423  ;;  %v1429_v42 = vpop.permute.xlu0 %1428 }
 0x1fe   : > { %v1509_v22 = vmul.f32 %v1424_v48, %v925_v40  ;;  %v1510_v8 = vmul.f32 %v1429_v42, %v928_v14  ;;  %v1827_v43 = vpop.f32.mrb[24].mxu1  ;;  %v1863_v7 = vpop.f32.mrb[24].mxu0 }
 0x1ff   : > { %v957_v29 = vadd.f32 %v1863_v7, %v1827_v43  ;;  %v787_v34 = vpop.f32.mrb[25].mxu1  ;;  %v948_v5 = vpop.f32.mrb[25].mxu0 }
 0x200   : > { %1541 = vst [vmem:[%s2232_s22 + $0x90] sm:$0xff] %v1509_v22  ;;  %1542 = vst [vmem:[%s2232_s22 + $0x98] sm:$0xff] %v1510_v8  ;;  %v949_v13 = vadd.f32 %v948_v5, %v787_v34  ;;  %v1828_v19 = vpop.f32.mrb[26].mxu1  ;;  %v1864_v25 = vpop.f32.mrb[26].mxu0 }
 0x201   : > { %v960_v26 = vadd.f32 %v1864_v25, %v1828_v19  ;;  %v790_v47 = vpop.f32.mrb[27].mxu1  ;;  %v951_v60 = vpop.f32.mrb[27].mxu0 }
 0x202   : > { %v952_v59 = vadd.f32 %v951_v60, %v790_v47  ;;  %v1434_v55 = vpop.permute.xlu1 %1433  ;;  %v1439_v21 = vpop.permute.xlu0 %1438 }
 0x203   : > { %v1511_v9 = vmul.f32 %v1434_v55, %v933_v2  ;;  %v1512_v50 = vmul.f32 %v1439_v21, %v936_v56 }
 0x205   : > { %1543 = vst [vmem:[%s2232_s22 + $0xa0] sm:$0xff] %v1511_v9  ;;  %1544 = vst [vmem:[%s2232_s22 + $0xa8] sm:$0xff] %v1512_v50 }
 0x206   : > { %v1444_v44 = vpop.permute.xlu1 %1443  ;;  %v1449_v12 = vpop.permute.xlu0 %1448 }
 0x207   : > { %v1513_v40 = vmul.f32 %v1444_v44, %v941_v35  ;;  %v1514_v18 = vmul.f32 %v1449_v12, %v944_v63 }
 0x209   : > { %1545 = vst [vmem:[%s2232_s22 + $0xb0] sm:$0xff] %v1513_v40  ;;  %1546 = vst [vmem:[%s2232_s22 + $0xb8] sm:$0xff] %v1514_v18 }
 0x20a   : > { %v1454_v31 = vpop.permute.xlu1 %1453  ;;  %v1459_v53 = vpop.permute.xlu0 %1458 }
 0x20b   : > { %v1515_v1 = vmul.f32 %v1454_v31, %v949_v13  ;;  %v1516_v41 = vmul.f32 %v1459_v53, %v952_v59 }
 0x20d   : > { %1547 = vst [vmem:[%s2232_s22 + $0xc0] sm:$0xff] %v1515_v1  ;;  %1548 = vst [vmem:[%s2232_s22 + $0xc8] sm:$0xff] %v1516_v41 }
 0x20e   : > { %v1464_v62 = vpop.permute.xlu1 %1463  ;;  %v1469_v54 = vpop.permute.xlu0 %1468 }
 0x20f   : > { %v1517_v37 = vmul.f32 %v1464_v62, %v957_v29  ;;  %v1518_v27 = vmul.f32 %v1469_v54, %v960_v26 }
 0x211   : > { %1549 = vst [vmem:[%s2232_s22 + $0xd0] sm:$0xff] %v1517_v37  ;;  %1550 = vst [vmem:[%s2232_s22 + $0xd8] sm:$0xff] %v1518_v27 }
 0x212   : > { %v1474_v14 = vpop.permute.xlu1 %1473  ;;  %v1479_v30 = vpop.permute.xlu0 %1478 }
 0x215   : > { %v1831_v38 = vpop.f32.mrb[28].mxu1  ;;  %v1867_v51 = vpop.f32.mrb[28].mxu0 }
 0x216   : > { %v1484_v33 = vpop.permute.xlu1 %1483  ;;  %v973_v15 = vadd.f32 %v1867_v51, %v1831_v38  ;;  %v803_v17 = vpop.f32.mrb[29].mxu1 }
 0x217   : > { %v964_v57 = vpop.f32.mrb[29].mxu0  ;;  %v1832_v35 = vpop.f32.mrb[30].mxu1 }
 0x218   : > { %v1521_v52 = vmul.f32 %v1484_v33, %v973_v15  ;;  %v965_v10 = vadd.f32 %v964_v57, %v803_v17  ;;  %v1868_v16 = vpop.f32.mrb[30].mxu0  ;;  %v806_v45 = vpop.f32.mrb[31].mxu1 }
 0x219   : > { %v976_v61 = vadd.f32 %v1868_v16, %v1832_v35  ;;  %v967_v32 = vpop.f32.mrb[31].mxu0  ;;  %v1489_v28 = vpop.permute.xlu0 %1488 }
 0x21a   : > { %1553 = vst [vmem:[%s2232_s22 + $0xf0] sm:$0xff] %v1521_v52  ;;  %v1519_v49 = vmul.f32 %v1474_v14, %v965_v10  ;;  %v968_v2 = vadd.f32 %v967_v32, %v806_v45 }
 0x21b   : > { %v1522_v23 = vmul.f32 %v1489_v28, %v976_v61 }
 0x21c   : > { %1551 = vst [vmem:[%s2232_s22 + $0xe0] sm:$0xff] %v1519_v49  ;;  %v1520_v20 = vmul.f32 %v1479_v30, %v968_v2 }
 0x21d   : > { %1554 = vst [vmem:[%s2232_s22 + $0xf8] sm:$0xff] %v1522_v23 }
 0x21e   : > { %1552 = vst [vmem:[%s2232_s22 + $0xe8] sm:$0xff] %v1520_v20 }
 0x21f PF: > { %p1753_p9 = scmp.ne.s32.totalorder %s2220_s13, 0 }
 0x220   : > { %v2131_v63 = vmov (!%p1753_p9), 0.0  }
 0x221   : > { %1558 = sbr.rel (%p1753_p9) target bundleno = 561 (0x231), region = 36  ;;  %1559 = vst [vmem:[%s2232_s22] sm:$0xff] (!%p1753_p9), %v2131_v63  ;;  %1560 = vst [vmem:[%s2232_s22 + $0x8] sm:$0xff] (!%p1753_p9), %v2131_v63 }
 0x222   : > { %1561 = vst [vmem:[%s2232_s22 + $0x10] sm:$0xff] (!%p1753_p9), %v2131_v63  ;;  %1562 = vst [vmem:[%s2232_s22 + $0x18] sm:$0xff] (!%p1753_p9), %v2131_v63 }
 0x223   : > { %1563 = vst [vmem:[%s2232_s22 + $0x20] sm:$0xff] (!%p1753_p9), %v2131_v63  ;;  %1564 = vst [vmem:[%s2232_s22 + $0x28] sm:$0xff] (!%p1753_p9), %v2131_v63 }
 0x224   : > { %1565 = vst [vmem:[%s2232_s22 + $0x30] sm:$0xff] (!%p1753_p9), %v2131_v63  ;;  %1566 = vst [vmem:[%s2232_s22 + $0x38] sm:$0xff] (!%p1753_p9), %v2131_v63 }
 0x225   : > { %1567 = vst [vmem:[%s2232_s22 + $0x40] sm:$0xff] (!%p1753_p9), %v2131_v63  ;;  %1568 = vst [vmem:[%s2232_s22 + $0x48] sm:$0xff] (!%p1753_p9), %v2131_v63 }
 0x226   : > { %1569 = vst [vmem:[%s2232_s22 + $0x50] sm:$0xff] (!%p1753_p9), %v2131_v63  ;;  %1570 = vst [vmem:[%s2232_s22 + $0x58] sm:$0xff] (!%p1753_p9), %v2131_v63 }
 0x227   : > { %1571 = vst [vmem:[%s2232_s22 + $0x60] sm:$0xff] (!%p1753_p9), %v2131_v63  ;;  %1572 = vst [vmem:[%s2232_s22 + $0x68] sm:$0xff] (!%p1753_p9), %v2131_v63 }
 0x228   : > { %1573 = vst [vmem:[%s2232_s22 + $0x70] sm:$0xff] %v2131_v63  ;;  %1574 = vst [vmem:[%s2232_s22 + $0x78] sm:$0xff] %v2131_v63 }
 0x229   : > { %1575 = vst [vmem:[%s2232_s22 + $0x80] sm:$0xff] %v2131_v63  ;;  %1576 = vst [vmem:[%s2232_s22 + $0x88] sm:$0xff] %v2131_v63 }
 0x22a   : > { %1577 = vst [vmem:[%s2232_s22 + $0x90] sm:$0xff] %v2131_v63  ;;  %1578 = vst [vmem:[%s2232_s22 + $0x98] sm:$0xff] %v2131_v63 }
 0x22b   : > { %1579 = vst [vmem:[%s2232_s22 + $0xa0] sm:$0xff] %v2131_v63  ;;  %1580 = vst [vmem:[%s2232_s22 + $0xa8] sm:$0xff] %v2131_v63 }
 0x22c   : > { %1581 = vst [vmem:[%s2232_s22 + $0xb0] sm:$0xff] %v2131_v63  ;;  %1582 = vst [vmem:[%s2232_s22 + $0xb8] sm:$0xff] %v2131_v63 }
 0x22d   : > { %1583 = vst [vmem:[%s2232_s22 + $0xc0] sm:$0xff] %v2131_v63  ;;  %1584 = vst [vmem:[%s2232_s22 + $0xc8] sm:$0xff] %v2131_v63 }
 0x22e   : > { %1585 = vst [vmem:[%s2232_s22 + $0xd0] sm:$0xff] %v2131_v63  ;;  %1586 = vst [vmem:[%s2232_s22 + $0xd8] sm:$0xff] %v2131_v63 }
 0x22f   : > { %1587 = vst [vmem:[%s2232_s22 + $0xe0] sm:$0xff] %v2131_v63  ;;  %1588 = vst [vmem:[%s2232_s22 + $0xe8] sm:$0xff] %v2131_v63 }
 0x230   : > { %1589 = vst [vmem:[%s2232_s22 + $0xf0] sm:$0xff] %v2131_v63  ;;  %1590 = vst [vmem:[%s2232_s22 + $0xf8] sm:$0xff] %v2131_v63 }
 0x231 PF: > { %s1760_s0 = sshll.u32 %s2187_s27, 12  ;;  %s1605_s10 = sshll.u32 %s2232_s22, 4  ;;  %s3078_s10 = int_to_ptr.vmem [resolvable:$true] %s1605_s10 }
 0x232   : > { %s3075_s5 = scalar_lea.hbm %s3126_s4, %s1760_s0  ;;  %s3082_s11 = scalar_lea.sflag [#allocation6], %s167_s9 }
 0x233   : > { %s2059_s12 = scalar_lea.vmem %s3078_s10, 4096  ;;  %s2132_s27 = smov [#allocation5]  }
 0x234   : > { %p2060_p10 = scmp.ne.s32.totalorder %s3078_s10, %s2059_s12  ;;  %s2063_s13 = sshll.u32 %s2132_s27, 4  ;;  %s2064_s13 = int_to_ptr.vmem [resolvable:$false] %s2063_s13 }
 0x235   : > { %s2065_s14 = scalar_lea.vmem %s2064_s13, 8192  ;;  %p2066_p13 = scmp.lt.s32.totalorder %s3078_s10, %s2064_s13 }
 0x236   : > { %p2061_p11 = pnand %p2060_p10, %p2204_p1  ;;  %p2067_p0 = scmp.lt.s32.totalorder %s2065_s14, %s2059_s12 }
 0x238   : > { %p2062_p12 = pneg %p2061_p11  ;;  %p2068_p3 = por %p2067_p0, %p2066_p13 }
 0x23a   : > { %p2069_p4 = pnand %p2068_p3, %p2062_p12 }
 0x23c   : > { %2072 = shalt.err (!%p2069_p4)
}
 0x23d   : > { %s2073_s9 = scalar_lea.hbm %s3075_s5, 4096  ;;  %s2077_s17 = scalar_lea.hbm %s3126_s4, 12288 }
 0x23e   : > { %p2074_p5 = scmp.ne.s32.totalorder %s3075_s5, %s2073_s9  ;;  %p2078_p8 = scmp.lt.u32.totalorder %s3075_s5, %s3126_s4 }
 0x23f   : > { %p2079_p9 = scmp.lt.u32.totalorder %s2077_s17, %s2073_s9  ;;  %p2081_p11 = scmp.lt.u32.totalorder %s2073_s9, %s3075_s5 }
 0x240   : > { %p2075_p6 = pnand %p2074_p5, %p2204_p1 }
 0x241   : > { %p2080_p10 = por %p2079_p9, %p2078_p8 }
 0x242   : > { %p2076_p7 = pneg %p2075_p6 }
 0x243   : > { %p2082_p12 = por %p2081_p11, %p2080_p10 }
 0x245   : > { %p2083_p13 = pnand %p2082_p12, %p2076_p7 }
 0x247   : > { %2086 = shalt.err (!%p2083_p13)
}
 0x248   : > { %s2133_s20 = smov 128   ;;  %s2134_s21 = smov 8  }
 0x249   : > { %1901 = dma.vmem_to_hbm [thread:$0]  (%p2204_p1), %s3078_s10, 4096, %s3075_s5, %s3082_s11, %s2133_s20, %s2133_s20, %s2134_s21  }
 0x24a PF: > { %p1907_p0 = scmp.ge.s32.totalorder %s2123_s26, 2  ;;  %s1620_s22 = sand.u32 1, %s2111_s1  }
 0x24b   : > { %s1621_s23 = scalar_lea.sflag [#allocation6], %s1620_s22 }
 0x24c   : > { %p1904_p3 = pnand %p1907_p0, %p2208_p2 }
 0x24e   : > { %2106 = dma.done.wait (!%p1904_p3), %s1621_s23, 4096  }
 0x24f   : > { %2108 = vsyncadd (!%p1904_p3), %s1621_s23, 4294963200  ;;  %p24_p4 = scmp.ge.s32.totalorder %s2191_s29, 5   ;;  %s3130_s1 = smov %s2115_s24 }
 0x250   : > { %s3131_s24 = smov %s2119_s25  ;;  %s3132_s25 = smov %s2202_s6 }
 0x251   : > { %s3133_s26 = smov %s2191_s29  ;;  %26 = sbr.rel (!%p24_p4) target bundleno = 28 (0x1c), region = 74 }
 0x258   :  { %1626 = vsyncpa [#allocation6], 1 }
 0x259   :  { %1628 = vsyncpa [#allocation6 + $0x1], 1 }

</bundles_post_ra>
